<compile_context>
chip_gen: v5e
topology: v5e:2x2
jax: 0.10.0
libtpu: 0.0.40
codegen_flags: <defaults>
</compile_context>

<pallas_src>
import jax
import jax.numpy as jnp
from jax.experimental import pallas as pl
from jax.experimental.pallas import tpu as pltpu

# ----------------------------- config ---------------------------------------
B, C, IMG, PATCH = 2, 3, 16, 8
NP = (IMG // PATCH) ** 2            # 4 patches per image
S = NP + 1                          # 5 tokens (CLS + patches)
BS = B * S                          # batch folded into sublane dim
D = 32                              # hidden size
NH, HD = 4, 8                       # heads, head_dim
I = 64                              # MLP intermediate
L = 2                               # encoder layers
K = C * PATCH * PATCH               # flattened patch size = 192
KP = pl.cdiv(K, 128) * 128          # lane-padded contraction dim = 256
EPS = 1e-5
SCALE = HD ** -0.5
NEG = -1e9


# ----------------------------- kernel ---------------------------------------
def clip_vision_kernel(
    tokens_ref,   # (BS, KP)    zero CLS row per image, lane-padded patches
    wpatch_ref,   # (KP, D)     flattened patch-embedding conv (zero-pad rows)
    pos_ref,      # (BS, D)     position emb (+ class emb folded into CLS rows)
    mask_ref,     # (BS, BS)    0 within an image, -1e9 across images
    lnio_ref,     # (4, D)      [pre_w, pre_b, post_w, post_b]
    ln_ref,       # (L, 4, D)   [ln1_w, ln1_b, ln2_w, ln2_b]
    attnw_ref,    # (L, D, 4D)  [qw*scale | kw | vw | ow]
    attnb_ref,    # (L, 1, 4D)  [qb*scale | kb | vb | ob]
    fc1w_ref,     # (L, D, I)
    fc2w_ref,     # (L, I, D)
    mlpb_ref,     # (L, 1, I+D) [fc1b | fc2b]
    out_ref,      # (B, D)      pooler_output
):
    f32 = jnp.float32

    def layernorm(x, w, b):
        mu = jnp.mean(x, axis=-1, keepdims=True)
        var = jnp.mean(jnp.square(x - mu), axis=-1, keepdims=True)
        return (x - mu) * jax.lax.rsqrt(var + EPS) * w + b

    # --- patch embedding: CLS rows of `tokens` are zero (conv has no bias),
    # so a single flat MXU matmul + one add covers CLS + patches + pos emb ---
    h = jnp.dot(tokens_ref[...], wpatch_ref[...],
                preferred_element_type=f32) + pos_ref[...]          # (BS, D)

    lnio = lnio_ref[...]
    h = layernorm(h, lnio[0:1, :], lnio[1:2, :])                    # pre_layrnorm

    mask = mask_ref[...]                                            # (BS, BS)

    # --- transformer encoder layers (statically unrolled, toy L=2) ---
    for l in range(L):
        lnp = ln_ref[l]                       # (4, D)
        wa = attnw_ref[l]                     # (D, 4D)
        ba = attnb_ref[l]                     # (1, 4D)

        # ---- self-attention ----
        res = h
        x = layernorm(h, lnp[0:1, :], lnp[1:2, :])
        # fused QKV: one MXU push with N = 3D (scale pre-folded into q cols)
        qkv = jnp.dot(x, wa[:, :3 * D],
                      preferred_element_type=f32) + ba[:, :3 * D]   # (BS, 3D)
        ow = wa[:, 3 * D:]                                          # (D, D)
        attn = jnp.zeros((BS, D), f32)
        for hh in range(NH):                  # static lane slices, no reshape
            q_h = qkv[:, hh * HD:(hh + 1) * HD]                     # (BS, HD)
            k_h = qkv[:, D + hh * HD:D + (hh + 1) * HD]
            v_h = qkv[:, 2 * D + hh * HD:2 * D + (hh + 1) * HD]
            s = jax.lax.dot_general(q_h, k_h, (((1,), (1,)), ((), ())),
                                    preferred_element_type=f32)     # (BS, BS)
            s = s + mask                      # block-diagonal batch separation
            m = jnp.max(s, axis=-1, keepdims=True)
            e = jnp.exp(s - m)
            p = e / jnp.sum(e, axis=-1, keepdims=True)              # exact softmax
            ctx = jnp.dot(p, v_h, preferred_element_type=f32)       # (BS, HD)
            # accumulate this head's slice of the output projection
            attn = attn + jnp.dot(ctx, ow[hh * HD:(hh + 1) * HD, :],
                                  preferred_element_type=f32)
        h = res + attn + ba[:, 3 * D:]

        # ---- MLP block (quick_gelu) ----
        res = h
        x = layernorm(h, lnp[2:3, :], lnp[3:4, :])
        mb = mlpb_ref[l]                                            # (1, I+D)
        x1 = jnp.dot(x, fc1w_ref[l], preferred_element_type=f32) + mb[:, :I]
        x1 = x1 * jax.nn.sigmoid(1.702 * x1)
        x2 = jnp.dot(x1, fc2w_ref[l], preferred_element_type=f32) + mb[:, I:]
        h = res + x2

    # --- pooler: post_layernorm of each image's CLS token (row b*S) ---
    cls_rows = jnp.concatenate([h[b * S:b * S + 1, :] for b in range(B)], axis=0)
    out_ref[...] = layernorm(cls_rows, lnio[2:3, :], lnio[3:4, :])


# ----------------------------- wrapper ---------------------------------------
def patchify(x):
    # (B, C, H, W) NCHW -> (B, NP, C*P*P); per-patch vector ordered (c, ph, pw),
    # matching the flattened Conv2d(patch) weight.
    b, c, hh, ww = x.shape
    gh, gw = hh // PATCH, ww // PATCH
    x = x.reshape(b, c, gh, PATCH, gw, PATCH)
    x = x.transpose(0, 2, 4, 1, 3, 5)
    return x.reshape(b, gh * gw, c * PATCH * PATCH)


def prepare_params(p):
    """One-time host-side packing: scale fold, CLS/pos fold, QKV|O fusion,
    bias/LN packing, lane padding, block-diagonal batch mask."""
    wpatch = jnp.pad(p['w_patch'], ((0, KP - K), (0, 0)))             # (KP, D)
    pos_cls = p['pos'].at[0, :].add(p['cls'][0])                      # (S, D)
    pos = jnp.tile(pos_cls, (B, 1))                                   # (BS, D)
    attn_w = jnp.concatenate(
        [p['qw'] * SCALE, p['kw'], p['vw'], p['ow']], axis=-1)        # (L, D, 4D)
    attn_b = jnp.concatenate(
        [p['qb'] * SCALE, p['kb'], p['vb'], p['ob']], axis=-1)        # (L, 1, 4D)
    ln_pack = jnp.concatenate(
        [p['ln1_w'], p['ln1_b'], p['ln2_w'], p['ln2_b']], axis=1)     # (L, 4, D)
    lnio = jnp.concatenate(
        [p['pre_w'], p['pre_b'], p['post_w'], p['post_b']], axis=0)   # (4, D)
    mlp_b = jnp.concatenate([p['fc1b'], p['fc2b']], axis=-1)          # (L, 1, I+D)
    img = jnp.arange(BS) // S
    mask = jnp.where(img[:, None] == img[None, :], 0.0, NEG).astype(jnp.float32)
    return dict(wpatch=wpatch, pos=pos, mask=mask, lnio=lnio, ln=ln_pack,
                attn_w=attn_w, attn_b=attn_b,
                fc1w=p['fc1w'], fc2w=p['fc2w'], mlp_b=mlp_b)


@jax.jit
def clip_forward(x, pp):
    patches = patchify(x)                                             # (B, NP, K)
    # zero CLS row in front of each image + lane-pad K -> KP, then fold the
    # batch into the sublane dimension.
    tokens = jnp.pad(patches, ((0, 0), (1, 0), (0, KP - K))).reshape(BS, KP)

    vmem = pl.BlockSpec(memory_space=pltpu.MemorySpace.VMEM)          # whole array
    out = pl.pallas_call(
        clip_vision_kernel,
        out_shape=jax.ShapeDtypeStruct((B, D), jnp.float32),
        in_specs=[vmem] * 11,
        out_specs=vmem,
        # single invocation (no grid): every weight is VMEM-resident for the
        # toy config, no per-step pipeline bookkeeping.
    )(tokens, pp['wpatch'], pp['pos'], pp['mask'], pp['lnio'], pp['ln'],
      pp['attn_w'], pp['attn_b'], pp['fc1w'], pp['fc2w'], pp['mlp_b'])
    return out


# -------------------------- pure-JAX reference --------------------------------
def clip_ref(x, p):
    def ln(t, w, b):
        mu = t.mean(-1, keepdims=True)
        var = ((t - mu) ** 2).mean(-1, keepdims=True)
        return (t - mu) * jax.lax.rsqrt(var + EPS) * w + b

    patches = patchify(x)
    pe = jnp.einsum('bpk,kd->bpd', patches, p['w_patch'])
    cls_tok = jnp.broadcast_to(p['cls'][None], (B, 1, D))
    h = jnp.concatenate([cls_tok, pe], axis=1) + p['pos'][None]
    h = ln(h, p['pre_w'], p['pre_b'])
    for l in range(L):
        res = h
        xx = ln(h, p['ln1_w'][l], p['ln1_b'][l])
        q = (xx @ p['qw'][l] + p['qb'][l]) * SCALE
        k = xx @ p['kw'][l] + p['kb'][l]
        v = xx @ p['vw'][l] + p['vb'][l]
        qh = q.reshape(B, S, NH, HD).transpose(0, 2, 1, 3)
        kh = k.reshape(B, S, NH, HD).transpose(0, 2, 1, 3)
        vh = v.reshape(B, S, NH, HD).transpose(0, 2, 1, 3)
        a = jax.nn.softmax(jnp.einsum('bhqd,bhkd->bhqk', qh, kh), axis=-1)
        o = jnp.einsum('bhqk,bhkd->bhqd', a, vh).transpose(0, 2, 1, 3).reshape(B, S, D)
        h = res + (o @ p['ow'][l] + p['ob'][l])
        res = h
        xx = ln(h, p['ln2_w'][l], p['ln2_b'][l])
        x1 = xx @ p['fc1w'][l] + p['fc1b'][l]
        x1 = x1 * jax.nn.sigmoid(1.702 * x1)
        h = res + (x1 @ p['fc2w'][l] + p['fc2b'][l])
    return ln(h[:, 0, :], p['post_w'], p['post_b'])


# ----------------------------- params ----------------------------------------
def make_params(key):
    keys = iter(jax.random.split(key, 32))

    def nrm(shape, scale=0.02):
        return jax.random.normal(next(keys), shape, jnp.float32) * scale

    f32 = jnp.float32
    return dict(
        w_patch=nrm((K, D)),
        cls=nrm((1, D)),
        pos=nrm((S, D)),
        pre_w=jnp.ones((1, D), f32), pre_b=jnp.zeros((1, D), f32),
        ln1_w=jnp.ones((L, 1, D), f32), ln1_b=jnp.zeros((L, 1, D), f32),
        qw=nrm((L, D, D)), qb=nrm((L, 1, D)),
        kw=nrm((L, D, D)), kb=nrm((L, 1, D)),
        vw=nrm((L, D, D)), vb=nrm((L, 1, D)),
        ow=nrm((L, D, D)), ob=nrm((L, 1, D)),
        ln2_w=jnp.ones((L, 1, D), f32), ln2_b=jnp.zeros((L, 1, D), f32),
        fc1w=nrm((L, D, I)), fc1b=nrm((L, 1, I)),
        fc2w=nrm((L, I, D)), fc2b=nrm((L, 1, D)),
        post_w=jnp.ones((1, D), f32), post_b=jnp.zeros((1, D), f32),
    )


# ------------------------------ main ------------------------------------------
if __name__ == "__main__":
    key = jax.random.PRNGKey(0)
    kx, kp = jax.random.split(key)
    x = jax.random.normal(kx, (B, C, IMG, IMG), jnp.float32)   # NCHW like PyTorch
    params = make_params(kp)
    packed = prepare_params(params)          # one-time host-side packing

    out = jax.block_until_ready(clip_forward(x, packed))
    ref = clip_ref(x, params)

    assert out.shape == (B, D), out.shape
    assert bool(jnp.all(jnp.isfinite(out)))
    assert bool(jnp.allclose(out, ref, atol=1e-2, rtol=1e-2)), \
        f"max abs diff {float(jnp.max(jnp.abs(out - ref)))}"
    print("KERNEL_OK")
</pallas_src>

<mosaic_0001>
module attributes {stable_mosaic.version = 11 : i64} {
  func.func @clip_vision_kernel(%arg0: memref<10x256xf32, #tpu.memory_space<vmem>>, %arg1: memref<256x32xf32, #tpu.memory_space<vmem>>, %arg2: memref<10x32xf32, #tpu.memory_space<vmem>>, %arg3: memref<10x10xf32, #tpu.memory_space<vmem>>, %arg4: memref<4x32xf32, #tpu.memory_space<vmem>>, %arg5: memref<2x4x32xf32, #tpu.memory_space<vmem>>, %arg6: memref<2x32x128xf32, #tpu.memory_space<vmem>>, %arg7: memref<2x1x128xf32, #tpu.memory_space<vmem>>, %arg8: memref<2x32x64xf32, #tpu.memory_space<vmem>>, %arg9: memref<2x64x32xf32, #tpu.memory_space<vmem>>, %arg10: memref<2x1x96xf32, #tpu.memory_space<vmem>>, %arg11: memref<2x32xf32, #tpu.memory_space<vmem>>) attributes {dimension_semantics = [], scalar_prefetch = 0 : i64, scratch_operands = 0 : i64, tpu.core_type = #tpu.core_type<tc>} {
    %c0 = arith.constant 0 : index
    %c0_0 = arith.constant 0 : index
    %0 = vector.load %arg0[%c0, %c0_0] : memref<10x256xf32, #tpu.memory_space<vmem>>, vector<10x256xf32>
    %c0_1 = arith.constant 0 : index
    %c0_2 = arith.constant 0 : index
    %1 = vector.load %arg1[%c0_1, %c0_2] : memref<256x32xf32, #tpu.memory_space<vmem>>, vector<256x32xf32>
    %cst = arith.constant dense<0.000000e+00> : vector<10x32xf32>
    %2 = tpu.matmul %0, %1, %cst {dimension_numbers = #tpu.dot_dimension_numbers<[1], [0], [0], [1], [0, 0, 1, 1], [], []>} : vector<10x256xf32>, vector<256x32xf32>, vector<10x32xf32> -> vector<10x32xf32>
    %c0_3 = arith.constant 0 : index
    %c0_4 = arith.constant 0 : index
    %3 = vector.load %arg2[%c0_3, %c0_4] : memref<10x32xf32, #tpu.memory_space<vmem>>, vector<10x32xf32>
    %4 = arith.addf %2, %3 : vector<10x32xf32>
    %c0_5 = arith.constant 0 : index
    %c0_6 = arith.constant 0 : index
    %5 = vector.load %arg4[%c0_5, %c0_6] : memref<4x32xf32, #tpu.memory_space<vmem>>, vector<4x32xf32>
    %6 = vector.extract_strided_slice %5 {offsets = [0, 0], sizes = [1, 32], strides = [1, 1]} : vector<4x32xf32> to vector<1x32xf32>
    %7 = vector.extract_strided_slice %5 {offsets = [1, 0], sizes = [1, 32], strides = [1, 1]} : vector<4x32xf32> to vector<1x32xf32>
    %cst_7 = arith.constant dense<0.000000e+00> : vector<10xf32>
    %8 = vector.multi_reduction <add>, %4, %cst_7 [1] : vector<10x32xf32> to vector<10xf32>
    %9 = vector.shape_cast %8 : vector<10xf32> to vector<10x1xf32>
    %cst_8 = arith.constant 3.200000e+01 : f32
    %10 = vector.broadcast %cst_8 : f32 to vector<10x1xf32>
    %11 = arith.divf %9, %10 : vector<10x1xf32>
    %12 = vector.broadcast %11 : vector<10x1xf32> to vector<10x32xf32>
    %13 = arith.subf %4, %12 : vector<10x32xf32>
    %14 = arith.mulf %13, %13 : vector<10x32xf32>
    %cst_9 = arith.constant dense<0.000000e+00> : vector<10xf32>
    %15 = vector.multi_reduction <add>, %14, %cst_9 [1] : vector<10x32xf32> to vector<10xf32>
    %16 = vector.shape_cast %15 : vector<10xf32> to vector<10x1xf32>
    %cst_10 = arith.constant 3.200000e+01 : f32
    %17 = vector.broadcast %cst_10 : f32 to vector<10x1xf32>
    %18 = arith.divf %16, %17 : vector<10x1xf32>
    %19 = vector.broadcast %11 : vector<10x1xf32> to vector<10x32xf32>
    %20 = arith.subf %4, %19 : vector<10x32xf32>
    %cst_11 = arith.constant 9.99999974E-6 : f32
    %21 = vector.broadcast %cst_11 : f32 to vector<10x1xf32>
    %22 = arith.addf %18, %21 : vector<10x1xf32>
    %23 = math.rsqrt %22 : vector<10x1xf32>
    %24 = vector.broadcast %23 : vector<10x1xf32> to vector<10x32xf32>
    %25 = arith.mulf %20, %24 : vector<10x32xf32>
    %26 = vector.broadcast %6 : vector<1x32xf32> to vector<10x32xf32>
    %27 = arith.mulf %25, %26 : vector<10x32xf32>
    %28 = vector.broadcast %7 : vector<1x32xf32> to vector<10x32xf32>
    %29 = arith.addf %27, %28 : vector<10x32xf32>
    %c0_12 = arith.constant 0 : index
    %c0_13 = arith.constant 0 : index
    %30 = vector.load %arg3[%c0_12, %c0_13] : memref<10x10xf32, #tpu.memory_space<vmem>>, vector<10x10xf32>
    %c0_14 = arith.constant 0 : index
    %c0_15 = arith.constant 0 : index
    %c0_16 = arith.constant 0 : index
    %31 = vector.load %arg5[%c0_14, %c0_15, %c0_16] : memref<2x4x32xf32, #tpu.memory_space<vmem>>, vector<1x4x32xf32>
    %32 = vector.shape_cast %31 : vector<1x4x32xf32> to vector<4x32xf32>
    %c0_17 = arith.constant 0 : index
    %c0_18 = arith.constant 0 : index
    %c0_19 = arith.constant 0 : index
    %33 = vector.load %arg6[%c0_17, %c0_18, %c0_19] : memref<2x32x128xf32, #tpu.memory_space<vmem>>, vector<1x32x128xf32>
    %34 = vector.shape_cast %33 : vector<1x32x128xf32> to vector<32x128xf32>
    %c0_20 = arith.constant 0 : index
    %c0_21 = arith.constant 0 : index
    %c0_22 = arith.constant 0 : index
    %35 = vector.load %arg7[%c0_20, %c0_21, %c0_22] : memref<2x1x128xf32, #tpu.memory_space<vmem>>, vector<1x1x128xf32>
    %36 = vector.shape_cast %35 : vector<1x1x128xf32> to vector<1x128xf32>
    %37 = vector.extract_strided_slice %32 {offsets = [0, 0], sizes = [1, 32], strides = [1, 1]} : vector<4x32xf32> to vector<1x32xf32>
    %38 = vector.extract_strided_slice %32 {offsets = [1, 0], sizes = [1, 32], strides = [1, 1]} : vector<4x32xf32> to vector<1x32xf32>
    %cst_23 = arith.constant dense<0.000000e+00> : vector<10xf32>
    %39 = vector.multi_reduction <add>, %29, %cst_23 [1] : vector<10x32xf32> to vector<10xf32>
    %40 = vector.shape_cast %39 : vector<10xf32> to vector<10x1xf32>
    %cst_24 = arith.constant 3.200000e+01 : f32
    %41 = vector.broadcast %cst_24 : f32 to vector<10x1xf32>
    %42 = arith.divf %40, %41 : vector<10x1xf32>
    %43 = vector.broadcast %42 : vector<10x1xf32> to vector<10x32xf32>
    %44 = arith.subf %29, %43 : vector<10x32xf32>
    %45 = arith.mulf %44, %44 : vector<10x32xf32>
    %cst_25 = arith.constant dense<0.000000e+00> : vector<10xf32>
    %46 = vector.multi_reduction <add>, %45, %cst_25 [1] : vector<10x32xf32> to vector<10xf32>
    %47 = vector.shape_cast %46 : vector<10xf32> to vector<10x1xf32>
    %cst_26 = arith.constant 3.200000e+01 : f32
    %48 = vector.broadcast %cst_26 : f32 to vector<10x1xf32>
    %49 = arith.divf %47, %48 : vector<10x1xf32>
    %50 = vector.broadcast %42 : vector<10x1xf32> to vector<10x32xf32>
    %51 = arith.subf %29, %50 : vector<10x32xf32>
    %cst_27 = arith.constant 9.99999974E-6 : f32
    %52 = vector.broadcast %cst_27 : f32 to vector<10x1xf32>
    %53 = arith.addf %49, %52 : vector<10x1xf32>
    %54 = math.rsqrt %53 : vector<10x1xf32>
    %55 = vector.broadcast %54 : vector<10x1xf32> to vector<10x32xf32>
    %56 = arith.mulf %51, %55 : vector<10x32xf32>
    %57 = vector.broadcast %37 : vector<1x32xf32> to vector<10x32xf32>
    %58 = arith.mulf %56, %57 : vector<10x32xf32>
    %59 = vector.broadcast %38 : vector<1x32xf32> to vector<10x32xf32>
    %60 = arith.addf %58, %59 : vector<10x32xf32>
    %61 = vector.extract_strided_slice %34 {offsets = [0, 0], sizes = [32, 96], strides = [1, 1]} : vector<32x128xf32> to vector<32x96xf32>
    %cst_28 = arith.constant dense<0.000000e+00> : vector<10x96xf32>
    %62 = tpu.matmul %60, %61, %cst_28 {dimension_numbers = #tpu.dot_dimension_numbers<[1], [0], [0], [1], [0, 0, 1, 1], [], []>} : vector<10x32xf32>, vector<32x96xf32>, vector<10x96xf32> -> vector<10x96xf32>
    %63 = vector.extract_strided_slice %36 {offsets = [0, 0], sizes = [1, 96], strides = [1, 1]} : vector<1x128xf32> to vector<1x96xf32>
    %64 = vector.broadcast %63 : vector<1x96xf32> to vector<10x96xf32>
    %65 = arith.addf %62, %64 : vector<10x96xf32>
    %66 = vector.extract_strided_slice %34 {offsets = [0, 96], sizes = [32, 32], strides = [1, 1]} : vector<32x128xf32> to vector<32x32xf32>
    %cst_29 = arith.constant 0.000000e+00 : f32
    %67 = vector.broadcast %cst_29 : f32 to vector<10x32xf32>
    %68 = vector.extract_strided_slice %65 {offsets = [0, 0], sizes = [10, 8], strides = [1, 1]} : vector<10x96xf32> to vector<10x8xf32>
    %69 = vector.extract_strided_slice %65 {offsets = [0, 32], sizes = [10, 8], strides = [1, 1]} : vector<10x96xf32> to vector<10x8xf32>
    %70 = vector.extract_strided_slice %65 {offsets = [0, 64], sizes = [10, 8], strides = [1, 1]} : vector<10x96xf32> to vector<10x8xf32>
    %cst_30 = arith.constant dense<0.000000e+00> : vector<10x10xf32>
    %71 = tpu.matmul %68, %69, %cst_30 {dimension_numbers = #tpu.dot_dimension_numbers<[1], [1], [0], [0], [0, 0, 1, 0], [], []>} : vector<10x8xf32>, vector<10x8xf32>, vector<10x10xf32> -> vector<10x10xf32>
    %72 = arith.addf %71, %30 : vector<10x10xf32>
    %cst_31 = arith.constant dense<0xFF800000> : vector<10xf32>
    %73 = vector.multi_reduction <maximumf>, %72, %cst_31 [1] : vector<10x10xf32> to vector<10xf32>
    %74 = vector.shape_cast %73 : vector<10xf32> to vector<10x1xf32>
    %75 = vector.broadcast %74 : vector<10x1xf32> to vector<10x10xf32>
    %76 = arith.subf %72, %75 : vector<10x10xf32>
    %77 = math.exp %76 : vector<10x10xf32>
    %cst_32 = arith.constant dense<0.000000e+00> : vector<10xf32>
    %78 = vector.multi_reduction <add>, %77, %cst_32 [1] : vector<10x10xf32> to vector<10xf32>
    %79 = vector.shape_cast %78 : vector<10xf32> to vector<10x1xf32>
    %80 = vector.broadcast %79 : vector<10x1xf32> to vector<10x10xf32>
    %81 = arith.divf %77, %80 : vector<10x10xf32>
    %cst_33 = arith.constant dense<0.000000e+00> : vector<10x8xf32>
    %82 = tpu.matmul %81, %70, %cst_33 {dimension_numbers = #tpu.dot_dimension_numbers<[1], [0], [0], [1], [0, 0, 1, 1], [], []>} : vector<10x10xf32>, vector<10x8xf32>, vector<10x8xf32> -> vector<10x8xf32>
    %83 = vector.extract_strided_slice %66 {offsets = [0, 0], sizes = [8, 32], strides = [1, 1]} : vector<32x32xf32> to vector<8x32xf32>
    %cst_34 = arith.constant dense<0.000000e+00> : vector<10x32xf32>
    %84 = tpu.matmul %82, %83, %cst_34 {dimension_numbers = #tpu.dot_dimension_numbers<[1], [0], [0], [1], [0, 0, 1, 1], [], []>} : vector<10x8xf32>, vector<8x32xf32>, vector<10x32xf32> -> vector<10x32xf32>
    %85 = arith.addf %67, %84 : vector<10x32xf32>
    %86 = vector.extract_strided_slice %65 {offsets = [0, 8], sizes = [10, 8], strides = [1, 1]} : vector<10x96xf32> to vector<10x8xf32>
    %87 = vector.extract_strided_slice %65 {offsets = [0, 40], sizes = [10, 8], strides = [1, 1]} : vector<10x96xf32> to vector<10x8xf32>
    %88 = vector.extract_strided_slice %65 {offsets = [0, 72], sizes = [10, 8], strides = [1, 1]} : vector<10x96xf32> to vector<10x8xf32>
    %cst_35 = arith.constant dense<0.000000e+00> : vector<10x10xf32>
    %89 = tpu.matmul %86, %87, %cst_35 {dimension_numbers = #tpu.dot_dimension_numbers<[1], [1], [0], [0], [0, 0, 1, 0], [], []>} : vector<10x8xf32>, vector<10x8xf32>, vector<10x10xf32> -> vector<10x10xf32>
    %90 = arith.addf %89, %30 : vector<10x10xf32>
    %cst_36 = arith.constant dense<0xFF800000> : vector<10xf32>
    %91 = vector.multi_reduction <maximumf>, %90, %cst_36 [1] : vector<10x10xf32> to vector<10xf32>
    %92 = vector.shape_cast %91 : vector<10xf32> to vector<10x1xf32>
    %93 = vector.broadcast %92 : vector<10x1xf32> to vector<10x10xf32>
    %94 = arith.subf %90, %93 : vector<10x10xf32>
    %95 = math.exp %94 : vector<10x10xf32>
    %cst_37 = arith.constant dense<0.000000e+00> : vector<10xf32>
    %96 = vector.multi_reduction <add>, %95, %cst_37 [1] : vector<10x10xf32> to vector<10xf32>
    %97 = vector.shape_cast %96 : vector<10xf32> to vector<10x1xf32>
    %98 = vector.broadcast %97 : vector<10x1xf32> to vector<10x10xf32>
    %99 = arith.divf %95, %98 : vector<10x10xf32>
    %cst_38 = arith.constant dense<0.000000e+00> : vector<10x8xf32>
    %100 = tpu.matmul %99, %88, %cst_38 {dimension_numbers = #tpu.dot_dimension_numbers<[1], [0], [0], [1], [0, 0, 1, 1], [], []>} : vector<10x10xf32>, vector<10x8xf32>, vector<10x8xf32> -> vector<10x8xf32>
    %101 = vector.extract_strided_slice %66 {offsets = [8, 0], sizes = [8, 32], strides = [1, 1]} : vector<32x32xf32> to vector<8x32xf32>
    %cst_39 = arith.constant dense<0.000000e+00> : vector<10x32xf32>
    %102 = tpu.matmul %100, %101, %cst_39 {dimension_numbers = #tpu.dot_dimension_numbers<[1], [0], [0], [1], [0, 0, 1, 1], [], []>} : vector<10x8xf32>, vector<8x32xf32>, vector<10x32xf32> -> vector<10x32xf32>
    %103 = arith.addf %85, %102 : vector<10x32xf32>
    %104 = vector.extract_strided_slice %65 {offsets = [0, 16], sizes = [10, 8], strides = [1, 1]} : vector<10x96xf32> to vector<10x8xf32>
    %105 = vector.extract_strided_slice %65 {offsets = [0, 48], sizes = [10, 8], strides = [1, 1]} : vector<10x96xf32> to vector<10x8xf32>
    %106 = vector.extract_strided_slice %65 {offsets = [0, 80], sizes = [10, 8], strides = [1, 1]} : vector<10x96xf32> to vector<10x8xf32>
    %cst_40 = arith.constant dense<0.000000e+00> : vector<10x10xf32>
    %107 = tpu.matmul %104, %105, %cst_40 {dimension_numbers = #tpu.dot_dimension_numbers<[1], [1], [0], [0], [0, 0, 1, 0], [], []>} : vector<10x8xf32>, vector<10x8xf32>, vector<10x10xf32> -> vector<10x10xf32>
    %108 = arith.addf %107, %30 : vector<10x10xf32>
    %cst_41 = arith.constant dense<0xFF800000> : vector<10xf32>
    %109 = vector.multi_reduction <maximumf>, %108, %cst_41 [1] : vector<10x10xf32> to vector<10xf32>
    %110 = vector.shape_cast %109 : vector<10xf32> to vector<10x1xf32>
    %111 = vector.broadcast %110 : vector<10x1xf32> to vector<10x10xf32>
    %112 = arith.subf %108, %111 : vector<10x10xf32>
    %113 = math.exp %112 : vector<10x10xf32>
    %cst_42 = arith.constant dense<0.000000e+00> : vector<10xf32>
    %114 = vector.multi_reduction <add>, %113, %cst_42 [1] : vector<10x10xf32> to vector<10xf32>
    %115 = vector.shape_cast %114 : vector<10xf32> to vector<10x1xf32>
    %116 = vector.broadcast %115 : vector<10x1xf32> to vector<10x10xf32>
    %117 = arith.divf %113, %116 : vector<10x10xf32>
    %cst_43 = arith.constant dense<0.000000e+00> : vector<10x8xf32>
    %118 = tpu.matmul %117, %106, %cst_43 {dimension_numbers = #tpu.dot_dimension_numbers<[1], [0], [0], [1], [0, 0, 1, 1], [], []>} : vector<10x10xf32>, vector<10x8xf32>, vector<10x8xf32> -> vector<10x8xf32>
    %119 = vector.extract_strided_slice %66 {offsets = [16, 0], sizes = [8, 32], strides = [1, 1]} : vector<32x32xf32> to vector<8x32xf32>
    %cst_44 = arith.constant dense<0.000000e+00> : vector<10x32xf32>
    %120 = tpu.matmul %118, %119, %cst_44 {dimension_numbers = #tpu.dot_dimension_numbers<[1], [0], [0], [1], [0, 0, 1, 1], [], []>} : vector<10x8xf32>, vector<8x32xf32>, vector<10x32xf32> -> vector<10x32xf32>
    %121 = arith.addf %103, %120 : vector<10x32xf32>
    %122 = vector.extract_strided_slice %65 {offsets = [0, 24], sizes = [10, 8], strides = [1, 1]} : vector<10x96xf32> to vector<10x8xf32>
    %123 = vector.extract_strided_slice %65 {offsets = [0, 56], sizes = [10, 8], strides = [1, 1]} : vector<10x96xf32> to vector<10x8xf32>
    %124 = vector.extract_strided_slice %65 {offsets = [0, 88], sizes = [10, 8], strides = [1, 1]} : vector<10x96xf32> to vector<10x8xf32>
    %cst_45 = arith.constant dense<0.000000e+00> : vector<10x10xf32>
    %125 = tpu.matmul %122, %123, %cst_45 {dimension_numbers = #tpu.dot_dimension_numbers<[1], [1], [0], [0], [0, 0, 1, 0], [], []>} : vector<10x8xf32>, vector<10x8xf32>, vector<10x10xf32> -> vector<10x10xf32>
    %126 = arith.addf %125, %30 : vector<10x10xf32>
    %cst_46 = arith.constant dense<0xFF800000> : vector<10xf32>
    %127 = vector.multi_reduction <maximumf>, %126, %cst_46 [1] : vector<10x10xf32> to vector<10xf32>
    %128 = vector.shape_cast %127 : vector<10xf32> to vector<10x1xf32>
    %129 = vector.broadcast %128 : vector<10x1xf32> to vector<10x10xf32>
    %130 = arith.subf %126, %129 : vector<10x10xf32>
    %131 = math.exp %130 : vector<10x10xf32>
    %cst_47 = arith.constant dense<0.000000e+00> : vector<10xf32>
    %132 = vector.multi_reduction <add>, %131, %cst_47 [1] : vector<10x10xf32> to vector<10xf32>
    %133 = vector.shape_cast %132 : vector<10xf32> to vector<10x1xf32>
    %134 = vector.broadcast %133 : vector<10x1xf32> to vector<10x10xf32>
    %135 = arith.divf %131, %134 : vector<10x10xf32>
    %cst_48 = arith.constant dense<0.000000e+00> : vector<10x8xf32>
    %136 = tpu.matmul %135, %124, %cst_48 {dimension_numbers = #tpu.dot_dimension_numbers<[1], [0], [0], [1], [0, 0, 1, 1], [], []>} : vector<10x10xf32>, vector<10x8xf32>, vector<10x8xf32> -> vector<10x8xf32>
    %137 = vector.extract_strided_slice %66 {offsets = [24, 0], sizes = [8, 32], strides = [1, 1]} : vector<32x32xf32> to vector<8x32xf32>
    %cst_49 = arith.constant dense<0.000000e+00> : vector<10x32xf32>
    %138 = tpu.matmul %136, %137, %cst_49 {dimension_numbers = #tpu.dot_dimension_numbers<[1], [0], [0], [1], [0, 0, 1, 1], [], []>} : vector<10x8xf32>, vector<8x32xf32>, vector<10x32xf32> -> vector<10x32xf32>
    %139 = arith.addf %121, %138 : vector<10x32xf32>
    %140 = arith.addf %29, %139 : vector<10x32xf32>
    %141 = vector.extract_strided_slice %36 {offsets = [0, 96], sizes = [1, 32], strides = [1, 1]} : vector<1x128xf32> to vector<1x32xf32>
    %142 = vector.broadcast %141 : vector<1x32xf32> to vector<10x32xf32>
    %143 = arith.addf %140, %142 : vector<10x32xf32>
    %144 = vector.extract_strided_slice %32 {offsets = [2, 0], sizes = [1, 32], strides = [1, 1]} : vector<4x32xf32> to vector<1x32xf32>
    %145 = vector.extract_strided_slice %32 {offsets = [3, 0], sizes = [1, 32], strides = [1, 1]} : vector<4x32xf32> to vector<1x32xf32>
    %cst_50 = arith.constant dense<0.000000e+00> : vector<10xf32>
    %146 = vector.multi_reduction <add>, %143, %cst_50 [1] : vector<10x32xf32> to vector<10xf32>
    %147 = vector.shape_cast %146 : vector<10xf32> to vector<10x1xf32>
    %cst_51 = arith.constant 3.200000e+01 : f32
    %148 = vector.broadcast %cst_51 : f32 to vector<10x1xf32>
    %149 = arith.divf %147, %148 : vector<10x1xf32>
    %150 = vector.broadcast %149 : vector<10x1xf32> to vector<10x32xf32>
    %151 = arith.subf %143, %150 : vector<10x32xf32>
    %152 = arith.mulf %151, %151 : vector<10x32xf32>
    %cst_52 = arith.constant dense<0.000000e+00> : vector<10xf32>
    %153 = vector.multi_reduction <add>, %152, %cst_52 [1] : vector<10x32xf32> to vector<10xf32>
    %154 = vector.shape_cast %153 : vector<10xf32> to vector<10x1xf32>
    %cst_53 = arith.constant 3.200000e+01 : f32
    %155 = vector.broadcast %cst_53 : f32 to vector<10x1xf32>
    %156 = arith.divf %154, %155 : vector<10x1xf32>
    %157 = vector.broadcast %149 : vector<10x1xf32> to vector<10x32xf32>
    %158 = arith.subf %143, %157 : vector<10x32xf32>
    %cst_54 = arith.constant 9.99999974E-6 : f32
    %159 = vector.broadcast %cst_54 : f32 to vector<10x1xf32>
    %160 = arith.addf %156, %159 : vector<10x1xf32>
    %161 = math.rsqrt %160 : vector<10x1xf32>
    %162 = vector.broadcast %161 : vector<10x1xf32> to vector<10x32xf32>
    %163 = arith.mulf %158, %162 : vector<10x32xf32>
    %164 = vector.broadcast %144 : vector<1x32xf32> to vector<10x32xf32>
    %165 = arith.mulf %163, %164 : vector<10x32xf32>
    %166 = vector.broadcast %145 : vector<1x32xf32> to vector<10x32xf32>
    %167 = arith.addf %165, %166 : vector<10x32xf32>
    %c0_55 = arith.constant 0 : index
    %c0_56 = arith.constant 0 : index
    %c0_57 = arith.constant 0 : index
    %168 = vector.load %arg10[%c0_55, %c0_56, %c0_57] : memref<2x1x96xf32, #tpu.memory_space<vmem>>, vector<1x1x96xf32>
    %169 = vector.shape_cast %168 : vector<1x1x96xf32> to vector<1x96xf32>
    %c0_58 = arith.constant 0 : index
    %c0_59 = arith.constant 0 : index
    %c0_60 = arith.constant 0 : index
    %170 = vector.load %arg8[%c0_58, %c0_59, %c0_60] : memref<2x32x64xf32, #tpu.memory_space<vmem>>, vector<1x32x64xf32>
    %171 = vector.shape_cast %170 : vector<1x32x64xf32> to vector<32x64xf32>
    %cst_61 = arith.constant dense<0.000000e+00> : vector<10x64xf32>
    %172 = tpu.matmul %167, %171, %cst_61 {dimension_numbers = #tpu.dot_dimension_numbers<[1], [0], [0], [1], [0, 0, 1, 1], [], []>} : vector<10x32xf32>, vector<32x64xf32>, vector<10x64xf32> -> vector<10x64xf32>
    %173 = vector.extract_strided_slice %169 {offsets = [0, 0], sizes = [1, 64], strides = [1, 1]} : vector<1x96xf32> to vector<1x64xf32>
    %174 = vector.broadcast %173 : vector<1x64xf32> to vector<10x64xf32>
    %175 = arith.addf %172, %174 : vector<10x64xf32>
    %cst_62 = arith.constant 1.702000e+00 : f32
    %176 = vector.broadcast %cst_62 : f32 to vector<10x64xf32>
    %177 = arith.mulf %176, %175 : vector<10x64xf32>
    %178 = arith.negf %177 : vector<10x64xf32>
    %179 = math.exp %178 : vector<10x64xf32>
    %cst_63 = arith.constant 1.000000e+00 : f32
    %180 = vector.broadcast %cst_63 : f32 to vector<10x64xf32>
    %181 = arith.addf %180, %179 : vector<10x64xf32>
    %182 = arith.divf %180, %181 : vector<10x64xf32>
    %183 = arith.mulf %175, %182 : vector<10x64xf32>
    %c0_64 = arith.constant 0 : index
    %c0_65 = arith.constant 0 : index
    %c0_66 = arith.constant 0 : index
    %184 = vector.load %arg9[%c0_64, %c0_65, %c0_66] : memref<2x64x32xf32, #tpu.memory_space<vmem>>, vector<1x64x32xf32>
    %185 = vector.shape_cast %184 : vector<1x64x32xf32> to vector<64x32xf32>
    %cst_67 = arith.constant dense<0.000000e+00> : vector<10x32xf32>
    %186 = tpu.matmul %183, %185, %cst_67 {dimension_numbers = #tpu.dot_dimension_numbers<[1], [0], [0], [1], [0, 0, 1, 1], [], []>} : vector<10x64xf32>, vector<64x32xf32>, vector<10x32xf32> -> vector<10x32xf32>
    %187 = vector.extract_strided_slice %169 {offsets = [0, 64], sizes = [1, 32], strides = [1, 1]} : vector<1x96xf32> to vector<1x32xf32>
    %188 = vector.broadcast %187 : vector<1x32xf32> to vector<10x32xf32>
    %189 = arith.addf %186, %188 : vector<10x32xf32>
    %190 = arith.addf %143, %189 : vector<10x32xf32>
    %c1 = arith.constant 1 : index
    %c0_68 = arith.constant 0 : index
    %c0_69 = arith.constant 0 : index
    %191 = vector.load %arg5[%c1, %c0_68, %c0_69] : memref<2x4x32xf32, #tpu.memory_space<vmem>>, vector<1x4x32xf32>
    %192 = vector.shape_cast %191 : vector<1x4x32xf32> to vector<4x32xf32>
    %c1_70 = arith.constant 1 : index
    %c0_71 = arith.constant 0 : index
    %c0_72 = arith.constant 0 : index
    %193 = vector.load %arg6[%c1_70, %c0_71, %c0_72] : memref<2x32x128xf32, #tpu.memory_space<vmem>>, vector<1x32x128xf32>
    %194 = vector.shape_cast %193 : vector<1x32x128xf32> to vector<32x128xf32>
    %c1_73 = arith.constant 1 : index
    %c0_74 = arith.constant 0 : index
    %c0_75 = arith.constant 0 : index
    %195 = vector.load %arg7[%c1_73, %c0_74, %c0_75] : memref<2x1x128xf32, #tpu.memory_space<vmem>>, vector<1x1x128xf32>
    %196 = vector.shape_cast %195 : vector<1x1x128xf32> to vector<1x128xf32>
    %197 = vector.extract_strided_slice %192 {offsets = [0, 0], sizes = [1, 32], strides = [1, 1]} : vector<4x32xf32> to vector<1x32xf32>
    %198 = vector.extract_strided_slice %192 {offsets = [1, 0], sizes = [1, 32], strides = [1, 1]} : vector<4x32xf32> to vector<1x32xf32>
    %cst_76 = arith.constant dense<0.000000e+00> : vector<10xf32>
    %199 = vector.multi_reduction <add>, %190, %cst_76 [1] : vector<10x32xf32> to vector<10xf32>
    %200 = vector.shape_cast %199 : vector<10xf32> to vector<10x1xf32>
    %cst_77 = arith.constant 3.200000e+01 : f32
    %201 = vector.broadcast %cst_77 : f32 to vector<10x1xf32>
    %202 = arith.divf %200, %201 : vector<10x1xf32>
    %203 = vector.broadcast %202 : vector<10x1xf32> to vector<10x32xf32>
    %204 = arith.subf %190, %203 : vector<10x32xf32>
    %205 = arith.mulf %204, %204 : vector<10x32xf32>
    %cst_78 = arith.constant dense<0.000000e+00> : vector<10xf32>
    %206 = vector.multi_reduction <add>, %205, %cst_78 [1] : vector<10x32xf32> to vector<10xf32>
    %207 = vector.shape_cast %206 : vector<10xf32> to vector<10x1xf32>
    %cst_79 = arith.constant 3.200000e+01 : f32
    %208 = vector.broadcast %cst_79 : f32 to vector<10x1xf32>
    %209 = arith.divf %207, %208 : vector<10x1xf32>
    %210 = vector.broadcast %202 : vector<10x1xf32> to vector<10x32xf32>
    %211 = arith.subf %190, %210 : vector<10x32xf32>
    %cst_80 = arith.constant 9.99999974E-6 : f32
    %212 = vector.broadcast %cst_80 : f32 to vector<10x1xf32>
    %213 = arith.addf %209, %212 : vector<10x1xf32>
    %214 = math.rsqrt %213 : vector<10x1xf32>
    %215 = vector.broadcast %214 : vector<10x1xf32> to vector<10x32xf32>
    %216 = arith.mulf %211, %215 : vector<10x32xf32>
    %217 = vector.broadcast %197 : vector<1x32xf32> to vector<10x32xf32>
    %218 = arith.mulf %216, %217 : vector<10x32xf32>
    %219 = vector.broadcast %198 : vector<1x32xf32> to vector<10x32xf32>
    %220 = arith.addf %218, %219 : vector<10x32xf32>
    %221 = vector.extract_strided_slice %194 {offsets = [0, 0], sizes = [32, 96], strides = [1, 1]} : vector<32x128xf32> to vector<32x96xf32>
    %cst_81 = arith.constant dense<0.000000e+00> : vector<10x96xf32>
    %222 = tpu.matmul %220, %221, %cst_81 {dimension_numbers = #tpu.dot_dimension_numbers<[1], [0], [0], [1], [0, 0, 1, 1], [], []>} : vector<10x32xf32>, vector<32x96xf32>, vector<10x96xf32> -> vector<10x96xf32>
    %223 = vector.extract_strided_slice %196 {offsets = [0, 0], sizes = [1, 96], strides = [1, 1]} : vector<1x128xf32> to vector<1x96xf32>
    %224 = vector.broadcast %223 : vector<1x96xf32> to vector<10x96xf32>
    %225 = arith.addf %222, %224 : vector<10x96xf32>
    %226 = vector.extract_strided_slice %194 {offsets = [0, 96], sizes = [32, 32], strides = [1, 1]} : vector<32x128xf32> to vector<32x32xf32>
    %cst_82 = arith.constant 0.000000e+00 : f32
    %227 = vector.broadcast %cst_82 : f32 to vector<10x32xf32>
    %228 = vector.extract_strided_slice %225 {offsets = [0, 0], sizes = [10, 8], strides = [1, 1]} : vector<10x96xf32> to vector<10x8xf32>
    %229 = vector.extract_strided_slice %225 {offsets = [0, 32], sizes = [10, 8], strides = [1, 1]} : vector<10x96xf32> to vector<10x8xf32>
    %230 = vector.extract_strided_slice %225 {offsets = [0, 64], sizes = [10, 8], strides = [1, 1]} : vector<10x96xf32> to vector<10x8xf32>
    %cst_83 = arith.constant dense<0.000000e+00> : vector<10x10xf32>
    %231 = tpu.matmul %228, %229, %cst_83 {dimension_numbers = #tpu.dot_dimension_numbers<[1], [1], [0], [0], [0, 0, 1, 0], [], []>} : vector<10x8xf32>, vector<10x8xf32>, vector<10x10xf32> -> vector<10x10xf32>
    %232 = arith.addf %231, %30 : vector<10x10xf32>
    %cst_84 = arith.constant dense<0xFF800000> : vector<10xf32>
    %233 = vector.multi_reduction <maximumf>, %232, %cst_84 [1] : vector<10x10xf32> to vector<10xf32>
    %234 = vector.shape_cast %233 : vector<10xf32> to vector<10x1xf32>
    %235 = vector.broadcast %234 : vector<10x1xf32> to vector<10x10xf32>
    %236 = arith.subf %232, %235 : vector<10x10xf32>
    %237 = math.exp %236 : vector<10x10xf32>
    %cst_85 = arith.constant dense<0.000000e+00> : vector<10xf32>
    %238 = vector.multi_reduction <add>, %237, %cst_85 [1] : vector<10x10xf32> to vector<10xf32>
    %239 = vector.shape_cast %238 : vector<10xf32> to vector<10x1xf32>
    %240 = vector.broadcast %239 : vector<10x1xf32> to vector<10x10xf32>
    %241 = arith.divf %237, %240 : vector<10x10xf32>
    %cst_86 = arith.constant dense<0.000000e+00> : vector<10x8xf32>
    %242 = tpu.matmul %241, %230, %cst_86 {dimension_numbers = #tpu.dot_dimension_numbers<[1], [0], [0], [1], [0, 0, 1, 1], [], []>} : vector<10x10xf32>, vector<10x8xf32>, vector<10x8xf32> -> vector<10x8xf32>
    %243 = vector.extract_strided_slice %226 {offsets = [0, 0], sizes = [8, 32], strides = [1, 1]} : vector<32x32xf32> to vector<8x32xf32>
    %cst_87 = arith.constant dense<0.000000e+00> : vector<10x32xf32>
    %244 = tpu.matmul %242, %243, %cst_87 {dimension_numbers = #tpu.dot_dimension_numbers<[1], [0], [0], [1], [0, 0, 1, 1], [], []>} : vector<10x8xf32>, vector<8x32xf32>, vector<10x32xf32> -> vector<10x32xf32>
    %245 = arith.addf %227, %244 : vector<10x32xf32>
    %246 = vector.extract_strided_slice %225 {offsets = [0, 8], sizes = [10, 8], strides = [1, 1]} : vector<10x96xf32> to vector<10x8xf32>
    %247 = vector.extract_strided_slice %225 {offsets = [0, 40], sizes = [10, 8], strides = [1, 1]} : vector<10x96xf32> to vector<10x8xf32>
    %248 = vector.extract_strided_slice %225 {offsets = [0, 72], sizes = [10, 8], strides = [1, 1]} : vector<10x96xf32> to vector<10x8xf32>
    %cst_88 = arith.constant dense<0.000000e+00> : vector<10x10xf32>
    %249 = tpu.matmul %246, %247, %cst_88 {dimension_numbers = #tpu.dot_dimension_numbers<[1], [1], [0], [0], [0, 0, 1, 0], [], []>} : vector<10x8xf32>, vector<10x8xf32>, vector<10x10xf32> -> vector<10x10xf32>
    %250 = arith.addf %249, %30 : vector<10x10xf32>
    %cst_89 = arith.constant dense<0xFF800000> : vector<10xf32>
    %251 = vector.multi_reduction <maximumf>, %250, %cst_89 [1] : vector<10x10xf32> to vector<10xf32>
    %252 = vector.shape_cast %251 : vector<10xf32> to vector<10x1xf32>
    %253 = vector.broadcast %252 : vector<10x1xf32> to vector<10x10xf32>
    %254 = arith.subf %250, %253 : vector<10x10xf32>
    %255 = math.exp %254 : vector<10x10xf32>
    %cst_90 = arith.constant dense<0.000000e+00> : vector<10xf32>
    %256 = vector.multi_reduction <add>, %255, %cst_90 [1] : vector<10x10xf32> to vector<10xf32>
    %257 = vector.shape_cast %256 : vector<10xf32> to vector<10x1xf32>
    %258 = vector.broadcast %257 : vector<10x1xf32> to vector<10x10xf32>
    %259 = arith.divf %255, %258 : vector<10x10xf32>
    %cst_91 = arith.constant dense<0.000000e+00> : vector<10x8xf32>
    %260 = tpu.matmul %259, %248, %cst_91 {dimension_numbers = #tpu.dot_dimension_numbers<[1], [0], [0], [1], [0, 0, 1, 1], [], []>} : vector<10x10xf32>, vector<10x8xf32>, vector<10x8xf32> -> vector<10x8xf32>
    %261 = vector.extract_strided_slice %226 {offsets = [8, 0], sizes = [8, 32], strides = [1, 1]} : vector<32x32xf32> to vector<8x32xf32>
    %cst_92 = arith.constant dense<0.000000e+00> : vector<10x32xf32>
    %262 = tpu.matmul %260, %261, %cst_92 {dimension_numbers = #tpu.dot_dimension_numbers<[1], [0], [0], [1], [0, 0, 1, 1], [], []>} : vector<10x8xf32>, vector<8x32xf32>, vector<10x32xf32> -> vector<10x32xf32>
    %263 = arith.addf %245, %262 : vector<10x32xf32>
    %264 = vector.extract_strided_slice %225 {offsets = [0, 16], sizes = [10, 8], strides = [1, 1]} : vector<10x96xf32> to vector<10x8xf32>
    %265 = vector.extract_strided_slice %225 {offsets = [0, 48], sizes = [10, 8], strides = [1, 1]} : vector<10x96xf32> to vector<10x8xf32>
    %266 = vector.extract_strided_slice %225 {offsets = [0, 80], sizes = [10, 8], strides = [1, 1]} : vector<10x96xf32> to vector<10x8xf32>
    %cst_93 = arith.constant dense<0.000000e+00> : vector<10x10xf32>
    %267 = tpu.matmul %264, %265, %cst_93 {dimension_numbers = #tpu.dot_dimension_numbers<[1], [1], [0], [0], [0, 0, 1, 0], [], []>} : vector<10x8xf32>, vector<10x8xf32>, vector<10x10xf32> -> vector<10x10xf32>
    %268 = arith.addf %267, %30 : vector<10x10xf32>
    %cst_94 = arith.constant dense<0xFF800000> : vector<10xf32>
    %269 = vector.multi_reduction <maximumf>, %268, %cst_94 [1] : vector<10x10xf32> to vector<10xf32>
    %270 = vector.shape_cast %269 : vector<10xf32> to vector<10x1xf32>
    %271 = vector.broadcast %270 : vector<10x1xf32> to vector<10x10xf32>
    %272 = arith.subf %268, %271 : vector<10x10xf32>
    %273 = math.exp %272 : vector<10x10xf32>
    %cst_95 = arith.constant dense<0.000000e+00> : vector<10xf32>
    %274 = vector.multi_reduction <add>, %273, %cst_95 [1] : vector<10x10xf32> to vector<10xf32>
    %275 = vector.shape_cast %274 : vector<10xf32> to vector<10x1xf32>
    %276 = vector.broadcast %275 : vector<10x1xf32> to vector<10x10xf32>
    %277 = arith.divf %273, %276 : vector<10x10xf32>
    %cst_96 = arith.constant dense<0.000000e+00> : vector<10x8xf32>
    %278 = tpu.matmul %277, %266, %cst_96 {dimension_numbers = #tpu.dot_dimension_numbers<[1], [0], [0], [1], [0, 0, 1, 1], [], []>} : vector<10x10xf32>, vector<10x8xf32>, vector<10x8xf32> -> vector<10x8xf32>
    %279 = vector.extract_strided_slice %226 {offsets = [16, 0], sizes = [8, 32], strides = [1, 1]} : vector<32x32xf32> to vector<8x32xf32>
    %cst_97 = arith.constant dense<0.000000e+00> : vector<10x32xf32>
    %280 = tpu.matmul %278, %279, %cst_97 {dimension_numbers = #tpu.dot_dimension_numbers<[1], [0], [0], [1], [0, 0, 1, 1], [], []>} : vector<10x8xf32>, vector<8x32xf32>, vector<10x32xf32> -> vector<10x32xf32>
    %281 = arith.addf %263, %280 : vector<10x32xf32>
    %282 = vector.extract_strided_slice %225 {offsets = [0, 24], sizes = [10, 8], strides = [1, 1]} : vector<10x96xf32> to vector<10x8xf32>
    %283 = vector.extract_strided_slice %225 {offsets = [0, 56], sizes = [10, 8], strides = [1, 1]} : vector<10x96xf32> to vector<10x8xf32>
    %284 = vector.extract_strided_slice %225 {offsets = [0, 88], sizes = [10, 8], strides = [1, 1]} : vector<10x96xf32> to vector<10x8xf32>
    %cst_98 = arith.constant dense<0.000000e+00> : vector<10x10xf32>
    %285 = tpu.matmul %282, %283, %cst_98 {dimension_numbers = #tpu.dot_dimension_numbers<[1], [1], [0], [0], [0, 0, 1, 0], [], []>} : vector<10x8xf32>, vector<10x8xf32>, vector<10x10xf32> -> vector<10x10xf32>
    %286 = arith.addf %285, %30 : vector<10x10xf32>
    %cst_99 = arith.constant dense<0xFF800000> : vector<10xf32>
    %287 = vector.multi_reduction <maximumf>, %286, %cst_99 [1] : vector<10x10xf32> to vector<10xf32>
    %288 = vector.shape_cast %287 : vector<10xf32> to vector<10x1xf32>
    %289 = vector.broadcast %288 : vector<10x1xf32> to vector<10x10xf32>
    %290 = arith.subf %286, %289 : vector<10x10xf32>
    %291 = math.exp %290 : vector<10x10xf32>
    %cst_100 = arith.constant dense<0.000000e+00> : vector<10xf32>
    %292 = vector.multi_reduction <add>, %291, %cst_100 [1] : vector<10x10xf32> to vector<10xf32>
    %293 = vector.shape_cast %292 : vector<10xf32> to vector<10x1xf32>
    %294 = vector.broadcast %293 : vector<10x1xf32> to vector<10x10xf32>
    %295 = arith.divf %291, %294 : vector<10x10xf32>
    %cst_101 = arith.constant dense<0.000000e+00> : vector<10x8xf32>
    %296 = tpu.matmul %295, %284, %cst_101 {dimension_numbers = #tpu.dot_dimension_numbers<[1], [0], [0], [1], [0, 0, 1, 1], [], []>} : vector<10x10xf32>, vector<10x8xf32>, vector<10x8xf32> -> vector<10x8xf32>
    %297 = vector.extract_strided_slice %226 {offsets = [24, 0], sizes = [8, 32], strides = [1, 1]} : vector<32x32xf32> to vector<8x32xf32>
    %cst_102 = arith.constant dense<0.000000e+00> : vector<10x32xf32>
    %298 = tpu.matmul %296, %297, %cst_102 {dimension_numbers = #tpu.dot_dimension_numbers<[1], [0], [0], [1], [0, 0, 1, 1], [], []>} : vector<10x8xf32>, vector<8x32xf32>, vector<10x32xf32> -> vector<10x32xf32>
    %299 = arith.addf %281, %298 : vector<10x32xf32>
    %300 = arith.addf %190, %299 : vector<10x32xf32>
    %301 = vector.extract_strided_slice %196 {offsets = [0, 96], sizes = [1, 32], strides = [1, 1]} : vector<1x128xf32> to vector<1x32xf32>
    %302 = vector.broadcast %301 : vector<1x32xf32> to vector<10x32xf32>
    %303 = arith.addf %300, %302 : vector<10x32xf32>
    %304 = vector.extract_strided_slice %192 {offsets = [2, 0], sizes = [1, 32], strides = [1, 1]} : vector<4x32xf32> to vector<1x32xf32>
    %305 = vector.extract_strided_slice %192 {offsets = [3, 0], sizes = [1, 32], strides = [1, 1]} : vector<4x32xf32> to vector<1x32xf32>
    %cst_103 = arith.constant dense<0.000000e+00> : vector<10xf32>
    %306 = vector.multi_reduction <add>, %303, %cst_103 [1] : vector<10x32xf32> to vector<10xf32>
    %307 = vector.shape_cast %306 : vector<10xf32> to vector<10x1xf32>
    %cst_104 = arith.constant 3.200000e+01 : f32
    %308 = vector.broadcast %cst_104 : f32 to vector<10x1xf32>
    %309 = arith.divf %307, %308 : vector<10x1xf32>
    %310 = vector.broadcast %309 : vector<10x1xf32> to vector<10x32xf32>
    %311 = arith.subf %303, %310 : vector<10x32xf32>
    %312 = arith.mulf %311, %311 : vector<10x32xf32>
    %cst_105 = arith.constant dense<0.000000e+00> : vector<10xf32>
    %313 = vector.multi_reduction <add>, %312, %cst_105 [1] : vector<10x32xf32> to vector<10xf32>
    %314 = vector.shape_cast %313 : vector<10xf32> to vector<10x1xf32>
    %cst_106 = arith.constant 3.200000e+01 : f32
    %315 = vector.broadcast %cst_106 : f32 to vector<10x1xf32>
    %316 = arith.divf %314, %315 : vector<10x1xf32>
    %317 = vector.broadcast %309 : vector<10x1xf32> to vector<10x32xf32>
    %318 = arith.subf %303, %317 : vector<10x32xf32>
    %cst_107 = arith.constant 9.99999974E-6 : f32
    %319 = vector.broadcast %cst_107 : f32 to vector<10x1xf32>
    %320 = arith.addf %316, %319 : vector<10x1xf32>
    %321 = math.rsqrt %320 : vector<10x1xf32>
    %322 = vector.broadcast %321 : vector<10x1xf32> to vector<10x32xf32>
    %323 = arith.mulf %318, %322 : vector<10x32xf32>
    %324 = vector.broadcast %304 : vector<1x32xf32> to vector<10x32xf32>
    %325 = arith.mulf %323, %324 : vector<10x32xf32>
    %326 = vector.broadcast %305 : vector<1x32xf32> to vector<10x32xf32>
    %327 = arith.addf %325, %326 : vector<10x32xf32>
    %c1_108 = arith.constant 1 : index
    %c0_109 = arith.constant 0 : index
    %c0_110 = arith.constant 0 : index
    %328 = vector.load %arg10[%c1_108, %c0_109, %c0_110] : memref<2x1x96xf32, #tpu.memory_space<vmem>>, vector<1x1x96xf32>
    %329 = vector.shape_cast %328 : vector<1x1x96xf32> to vector<1x96xf32>
    %c1_111 = arith.constant 1 : index
    %c0_112 = arith.constant 0 : index
    %c0_113 = arith.constant 0 : index
    %330 = vector.load %arg8[%c1_111, %c0_112, %c0_113] : memref<2x32x64xf32, #tpu.memory_space<vmem>>, vector<1x32x64xf32>
    %331 = vector.shape_cast %330 : vector<1x32x64xf32> to vector<32x64xf32>
    %cst_114 = arith.constant dense<0.000000e+00> : vector<10x64xf32>
    %332 = tpu.matmul %327, %331, %cst_114 {dimension_numbers = #tpu.dot_dimension_numbers<[1], [0], [0], [1], [0, 0, 1, 1], [], []>} : vector<10x32xf32>, vector<32x64xf32>, vector<10x64xf32> -> vector<10x64xf32>
    %333 = vector.extract_strided_slice %329 {offsets = [0, 0], sizes = [1, 64], strides = [1, 1]} : vector<1x96xf32> to vector<1x64xf32>
    %334 = vector.broadcast %333 : vector<1x64xf32> to vector<10x64xf32>
    %335 = arith.addf %332, %334 : vector<10x64xf32>
    %cst_115 = arith.constant 1.702000e+00 : f32
    %336 = vector.broadcast %cst_115 : f32 to vector<10x64xf32>
    %337 = arith.mulf %336, %335 : vector<10x64xf32>
    %338 = arith.negf %337 : vector<10x64xf32>
    %339 = math.exp %338 : vector<10x64xf32>
    %cst_116 = arith.constant 1.000000e+00 : f32
    %340 = vector.broadcast %cst_116 : f32 to vector<10x64xf32>
    %341 = arith.addf %340, %339 : vector<10x64xf32>
    %342 = arith.divf %340, %341 : vector<10x64xf32>
    %343 = arith.mulf %335, %342 : vector<10x64xf32>
    %c1_117 = arith.constant 1 : index
    %c0_118 = arith.constant 0 : index
    %c0_119 = arith.constant 0 : index
    %344 = vector.load %arg9[%c1_117, %c0_118, %c0_119] : memref<2x64x32xf32, #tpu.memory_space<vmem>>, vector<1x64x32xf32>
    %345 = vector.shape_cast %344 : vector<1x64x32xf32> to vector<64x32xf32>
    %cst_120 = arith.constant dense<0.000000e+00> : vector<10x32xf32>
    %346 = tpu.matmul %343, %345, %cst_120 {dimension_numbers = #tpu.dot_dimension_numbers<[1], [0], [0], [1], [0, 0, 1, 1], [], []>} : vector<10x64xf32>, vector<64x32xf32>, vector<10x32xf32> -> vector<10x32xf32>
    %347 = vector.extract_strided_slice %329 {offsets = [0, 64], sizes = [1, 32], strides = [1, 1]} : vector<1x96xf32> to vector<1x32xf32>
    %348 = vector.broadcast %347 : vector<1x32xf32> to vector<10x32xf32>
    %349 = arith.addf %346, %348 : vector<10x32xf32>
    %350 = arith.addf %303, %349 : vector<10x32xf32>
    %351 = vector.extract_strided_slice %350 {offsets = [0, 0], sizes = [1, 32], strides = [1, 1]} : vector<10x32xf32> to vector<1x32xf32>
    %352 = vector.extract_strided_slice %350 {offsets = [5, 0], sizes = [1, 32], strides = [1, 1]} : vector<10x32xf32> to vector<1x32xf32>
    %353 = tpu.concatenate %351, %352 in 0 : vector<1x32xf32>, vector<1x32xf32> -> vector<2x32xf32>
    %354 = vector.extract_strided_slice %5 {offsets = [2, 0], sizes = [1, 32], strides = [1, 1]} : vector<4x32xf32> to vector<1x32xf32>
    %355 = vector.extract_strided_slice %5 {offsets = [3, 0], sizes = [1, 32], strides = [1, 1]} : vector<4x32xf32> to vector<1x32xf32>
    %cst_121 = arith.constant dense<0.000000e+00> : vector<2xf32>
    %356 = vector.multi_reduction <add>, %353, %cst_121 [1] : vector<2x32xf32> to vector<2xf32>
    %357 = vector.shape_cast %356 : vector<2xf32> to vector<2x1xf32>
    %cst_122 = arith.constant 3.200000e+01 : f32
    %358 = vector.broadcast %cst_122 : f32 to vector<2x1xf32>
    %359 = arith.divf %357, %358 : vector<2x1xf32>
    %360 = vector.broadcast %359 : vector<2x1xf32> to vector<2x32xf32>
    %361 = arith.subf %353, %360 : vector<2x32xf32>
    %362 = arith.mulf %361, %361 : vector<2x32xf32>
    %cst_123 = arith.constant dense<0.000000e+00> : vector<2xf32>
    %363 = vector.multi_reduction <add>, %362, %cst_123 [1] : vector<2x32xf32> to vector<2xf32>
    %364 = vector.shape_cast %363 : vector<2xf32> to vector<2x1xf32>
    %cst_124 = arith.constant 3.200000e+01 : f32
    %365 = vector.broadcast %cst_124 : f32 to vector<2x1xf32>
    %366 = arith.divf %364, %365 : vector<2x1xf32>
    %367 = vector.broadcast %359 : vector<2x1xf32> to vector<2x32xf32>
    %368 = arith.subf %353, %367 : vector<2x32xf32>
    %cst_125 = arith.constant 9.99999974E-6 : f32
    %369 = vector.broadcast %cst_125 : f32 to vector<2x1xf32>
    %370 = arith.addf %366, %369 : vector<2x1xf32>
    %371 = math.rsqrt %370 : vector<2x1xf32>
    %372 = vector.broadcast %371 : vector<2x1xf32> to vector<2x32xf32>
    %373 = arith.mulf %368, %372 : vector<2x32xf32>
    %374 = vector.broadcast %354 : vector<1x32xf32> to vector<2x32xf32>
    %375 = arith.mulf %373, %374 : vector<2x32xf32>
    %376 = vector.broadcast %355 : vector<1x32xf32> to vector<2x32xf32>
    %377 = arith.addf %375, %376 : vector<2x32xf32>
    %c0_126 = arith.constant 0 : index
    %c0_127 = arith.constant 0 : index
    %378 = vector.load %arg11[%c0_126, %c0_127] : memref<2x32xf32, #tpu.memory_space<vmem>>, vector<2x32xf32>
    tpu.vector_store %arg11[%c0_126, %c0_127], %377 {strides = array<i32>} : memref<2x32xf32, #tpu.memory_space<vmem>>, vector<2x32xf32>,
    return
  }
}

</mosaic_0001>

<bundles_post_ra>
// kernel: clip_forward.1
= control target key start
LH: loop header
LB: loop body
LE: loop exit
PB: predicated region body
PF: predicated region fallthrough
CT: control target
= control target key end

     0   :  { %s3083_s0 = inlined_call_operand.vmem [shape: f32[10,256], index: 0, kind: input, shape index: {}]   ;;  %s3084_s1 = inlined_call_operand.vmem [shape: f32[256,32], index: 1, kind: input, shape index: {}]   ;;  %s3085_s2 = inlined_call_operand.vmem [shape: f32[10,32], index: 2, kind: input, shape index: {}]   ;;  %s3086_s3 = inlined_call_operand.vmem [shape: f32[10,10], index: 3, kind: input, shape index: {}]   ;;  %s3087_s4 = inlined_call_operand.vmem [shape: f32[4,32], index: 4, kind: input, shape index: {}]   ;;  %s3088_s5 = inlined_call_operand.vmem [shape: f32[2,4,32], index: 5, kind: input, shape index: {}]   ;;  %s3089_s6 = inlined_call_operand.vmem [shape: f32[2,32,128], index: 6, kind: input, shape index: {}]   ;;  %s3090_s7 = inlined_call_operand.vmem [shape: f32[2,1,128], index: 7, kind: input, shape index: {}]   ;;  %s3091_s8 = inlined_call_operand.vmem [shape: f32[2,32,64], index: 8, kind: input, shape index: {}]   ;;  %s3092_s9 = inlined_call_operand.vmem [shape: f32[2,64,32], index: 9, kind: input, shape index: {}]   ;;  %s3093_s10 = inlined_call_operand.vmem [shape: f32[2,1,96], index: 10, kind: input, shape index: {}]   ;;  %s3094_s11 = inlined_call_operand.hbm [shape: f32[2,32], index: 11, kind: output, shape index: {}]  }
   0x1   :  { %v58_v0 = vld [vmem:[%s3084_s1 + $0x78] sm:$0xff]  ;;  %v57_v1 = vld [vmem:[%s3084_s1 + $0x70] sm:$0xff]  ;;  %v56_v4 = vld [vmem:[%s3084_s1 + $0x68] sm:$0xff] }
   0x2   :  { %v74_v2 = vld [vmem:[%s3084_s1 + $0xf8] sm:$0xff]  ;;  %77 = vmatpush.msra.mxu0 %v58_v0  ;;  %v73_v3 = vld [vmem:[%s3084_s1 + $0xf0] sm:$0xff]  ;;  %v72_v5 = vld [vmem:[%s3084_s1 + $0xe8] sm:$0xff] }
   0x3   :  { %100 = vmatpush.msra.mxu1 %v74_v2  ;;  %v55_v6 = vld [vmem:[%s3084_s1 + $0x60] sm:$0xff]  ;;  %v54_v8 = vld [vmem:[%s3084_s1 + $0x58] sm:$0xff]  ;;  %v53_v10 = vld [vmem:[%s3084_s1 + $0x50] sm:$0xff] }
   0x4   :  { %78 = vmatpush.msra.mxu0 %v57_v1  ;;  %v71_v7 = vld [vmem:[%s3084_s1 + $0xe0] sm:$0xff]  ;;  %v70_v9 = vld [vmem:[%s3084_s1 + $0xd8] sm:$0xff]  ;;  %v69_v11 = vld [vmem:[%s3084_s1 + $0xd0] sm:$0xff] }
   0x5   :  { %101 = vmatpush.msra.mxu1 %v73_v3  ;;  %v52_v12 = vld [vmem:[%s3084_s1 + $0x48] sm:$0xff]  ;;  %v51_v14 = vld [vmem:[%s3084_s1 + $0x40] sm:$0xff] }
   0x6   :  { %79 = vmatpush.msra.mxu0 %v56_v4  ;;  %v68_v13 = vld [vmem:[%s3084_s1 + $0xc8] sm:$0xff]  ;;  %v67_v15 = vld [vmem:[%s3084_s1 + $0xc0] sm:$0xff] }
   0x7   :  { %102 = vmatpush.msra.mxu1 %v72_v5 }
   0x8   :  { %80 = vmatpush.msra.mxu0 %v55_v6 }
   0x9   :  { %103 = vmatpush.msra.mxu1 %v71_v7 }
   0xa   :  { %81 = vmatpush.msra.mxu0 %v54_v8 }
   0xb   :  { %104 = vmatpush.msra.mxu1 %v70_v9 }
   0xc   :  { %82 = vmatpush.msra.mxu0 %v53_v10 }
   0xd   :  { %105 = vmatpush.msra.mxu1 %v69_v11 }
   0xe   :  { %83 = vmatpush.msra.mxu0 %v52_v12 }
   0xf   :  { %106 = vmatpush.msra.mxu1 %v68_v13 }
  0x10   :  { %16 = vsyncpa [#allocation3], 0  ;;  %v50_v16 = vld [vmem:[%s3084_s1 + $0x38] sm:$0xff]  ;;  %84 = vmatpush.msra.mxu0 %v51_v14  ;;  %v49_v18 = vld [vmem:[%s3084_s1 + $0x30] sm:$0xff]  ;;  %vm124_vm0 = vcmask 261120   ;;  %vm128_vm1 = vcmask 254976  }
  0x11   :  { %v66_v17 = vld [vmem:[%s3084_s1 + $0xb8] sm:$0xff]  ;;  %107 = vmatpush.msra.mxu1 %v67_v15  ;;  %v65_v19 = vld [vmem:[%s3084_s1 + $0xb0] sm:$0xff]  ;;  %v48_v20 = vld [vmem:[%s3084_s1 + $0x28] sm:$0xff]  ;;  %v2289_v48 = vmov 32.0   ;;  %s2290_s28 = smov 96   ;;  %s2291_s29 = smov 64  }
  0x12   :  { %85 = vmatpush.msra.mxu0 %v50_v16  ;;  %v64_v21 = vld [vmem:[%s3084_s1 + $0xa8] sm:$0xff]  ;;  %v47_v22 = vld [vmem:[%s3084_s1 + $0x20] sm:$0xff]  ;;  %v46_v24 = vld [vmem:[%s3084_s1 + $0x18] sm:$0xff]  ;;  %2156 = vrcp.f32 %v2289_v48  ;;  %s2292_s30 = smov 88   ;;  %s2294_s12 = smov 32   ;;  %vm279_vm15 = vcmask 64512  }
  0x13   :  { %108 = vmatpush.msra.mxu1 %v66_v17  ;;  %v63_v23 = vld [vmem:[%s3084_s1 + $0xa0] sm:$0xff]  ;;  %v62_v25 = vld [vmem:[%s3084_s1 + $0x98] sm:$0xff]  ;;  %v45_v26 = vld [vmem:[%s3084_s1 + $0x10] sm:$0xff]  ;;  %s2295_s13 = smov 112   ;;  %s2296_s14 = smov 72  }
  0x14   :  { %86 = vmatpush.msra.mxu0 %v49_v18  ;;  %v61_v27 = vld [vmem:[%s3084_s1 + $0x90] sm:$0xff]  ;;  %v44_v28 = vld [vmem:[%s3084_s1 + $0x8] sm:$0xff]  ;;  %v43_v30 = vld [vmem:[%s3084_s1] sm:$0xff]  ;;  %s2297_s15 = smov 104   ;;  %s2298_s18 = smov 80  }
  0x15   :  { %109 = vmatpush.msra.mxu1 %v65_v19  ;;  %v60_v29 = vld [vmem:[%s3084_s1 + $0x88] sm:$0xff]  ;;  %v59_v31 = vld [vmem:[%s3084_s1 + $0x80] sm:$0xff]  ;;  %v41_v34 = vld [vmem:[%s3083_s0 + $0x10] sm:$0x3]  ;;  %s2293_s1 = smov 120   ;;  %s2299_s19 = smov 56  }
  0x16   :  { %87 = vmatpush.msra.mxu0 %v48_v20  ;;  %v39_v32 = vld [vmem:[%s3083_s0] sm:$0xff]  ;;  %v40_v33 = vld [vmem:[%s3083_s0 + $0x8] sm:$0xff]  ;;  %v42_v35 = vld [vmem:[%s3083_s0 + $0x18] sm:$0x3]  ;;  %s2300_s20 = smov 48   ;;  %s2301_s21 = smov 40  }
  0x17   :  { %110 = vmatpush.msra.mxu1 %v64_v21  ;;  %v75_v36 = vld [vmem:[%s3085_s2] sm:$0xff]  ;;  %v76_v42 = vld [vmem:[%s3085_s2 + $0x8] sm:$0x3]  ;;  %s2302_s2 = smov [#allocation2]  }
  0x18   :  { %88 = vmatpush.msra.mxu0 %v47_v22  ;;  %v2157_v49 = vpop.eup %2156  ;;  %v123_v12 = vld [vmem:[%s3087_s4] sm:$0xf] }
  0x19   :  { %111 = vmatpush.msra.mxu1 %v63_v23  ;;  %v133_v50 = vmul.f32 32.0, %v2157_v49  ;;  %vm137_vm2 = vweird.f32 %v2157_v49  ;;  %v177_v16 = vperm.slane %v123_v12, 0  ;;  %v180_v20 = vperm.slane %v123_v12, 1 }
  0x1a   :  { %89 = vmatpush.msra.mxu0 %v46_v24 }
  0x1b   :  { %112 = vmatpush.msra.mxu1 %v62_v25  ;;  %v134_v51 = vsub.f32 1.0, %v133_v50 }
  0x1c   :  { %90 = vmatpush.msra.mxu0 %v45_v26 }
  0x1d   :  { %113 = vmatpush.msra.mxu1 %v61_v27  ;;  %v135_v52 = vmul.f32 %v2157_v49, %v134_v51 }
  0x1e   :  { %91 = vmatpush.msra.mxu0 %v44_v28 }
  0x1f   :  { %114 = vmatpush.msra.mxu1 %v60_v29  ;;  %v136_v53 = vadd.f32 %v2157_v49, %v135_v52 }
  0x20   :  { %92 = vmatpush.msra.mxu0 %v43_v30 }
  0x21   :  { %115 = vmatpush.msra.mxu1 %v59_v31  ;;  %93 = vmatmul.f32.vlgmr.msra.gmra.mxu0 %v39_v32  ;;  %v2479_v54 = vsel %vm137_vm2, %v2157_v49, %v136_v53  ;;  %vm372_vm2 = vcmask 1041408  }
  0x22   :  { %116 = vmatmul.f32.vlgmr.msra.gmra.mxu1 %v40_v33 }
  0x29   :  { %96 = vmatmul.f32.gmra.mxu0 %v41_v34 }
  0x2a   :  { %119 = vmatmul.f32.gmra.mxu1 %v42_v35 }
  0x9e   :  { %v94_v37 = vpop.f32.mrf.mxu0 }
  0x9f   :  { %v117_v38 = vpop.f32.mrf.mxu1  ;;  %v95_v39 = vadd.f32 %v94_v37, %v75_v36 }
  0xa1   :  { %v118_v40 = vadd.f32 %v117_v38, %v95_v39 }
  0xa3   :  { %v125_v41 = vsel %vm124_vm0, %v118_v40, 0.0 }
  0xa4   :  { %126 = vadd.xlane.f32.xlu0 %v125_v41 }
  0xa6   :  { %v97_v43 = vpop.f32.mrf.mxu0 }
  0xa7   :  { %v120_v44 = vpop.f32.mrf.mxu1  ;;  %v98_v45 = vadd.f32 %v97_v43, %v76_v42  ;;  %v2507_v42 = vld [vmem:[%s3089_s6 + $0x18] sm:$0xff]  ;;  %v2513_v43 = vld [vmem:[%s3089_s6 + $0x10] sm:$0xff] }
  0xa8   :  { %262 = vmatpush.msra.mxu2 %v2507_v42 }
  0xa9   :  { %v121_v46 = vadd.f32 %v120_v44, %v98_v45  ;;  %v2519_v44 = vld [vmem:[%s3089_s6 + $0x8] sm:$0xff]  ;;  %v186_v45 = vld [vmem:[%s3089_s6] sm:$0xff] }
  0xaa   :  { %263 = vmatpush.msra.mxu2 %v2513_v43 }
  0xab   :  { %v129_v47 = vsel %vm128_vm1, %v121_v46, 0.0 }
  0xac   :  { %130 = vadd.xlane.f32.xlu0 %v129_v47  ;;  %264 = vmatpush.msra.mxu2 %v2519_v44 }
  0xae   :  { %265 = vmatpush.msra.mxu2 %v186_v45 }
 0x117   :  { %v127_v55 = vpop.xlane.xlu0 %126 }
 0x118   :  { %v139_v56 = vmul.f32 %v2479_v54, %v127_v55 }
 0x11a   :  { %v141_v57 = vsub.f32 %v118_v40, %v139_v56 }
 0x11c   :  { %v143_v58 = vmul.f32 %v141_v57, %v141_v57 }
 0x11e   :  { %v145_v59 = vsel %vm124_vm0, %v143_v58, 0.0 }
 0x11f   :  { %146 = vadd.xlane.f32.xlu1 %v145_v59  ;;  %v131_v60 = vpop.xlane.xlu0 %130  ;;  %v2532_v59 = vld [vmem:[%s3088_s5] sm:$0xf] }
 0x120   :  { %v140_v61 = vmul.f32 %v2479_v54, %v131_v60 }
 0x122   :  { %v142_v62 = vsub.f32 %v121_v46, %v140_v61  ;;  %v2147_v46 = vpack.i.bf16 %v2507_v42, %v2513_v43 }
 0x124   :  { %v144_v63 = vmul.f32 %v142_v62, %v142_v62 }
 0x126   :  { %v148_v0 = vsel %vm128_vm1, %v144_v63, 0.0  ;;  %v235_v63 = vperm.slane %v2532_v59, 0 }
 0x127   :  { %149 = vadd.xlane.f32.xlu1 %v148_v0 }
 0x192   :  { %v147_v1 = vpop.xlane.xlu1 %146 }
 0x193   :  { %v151_v2 = vmul.f32 %v147_v1, %v2479_v54 }
 0x195   :  { %v153_v3 = vadd.f32 1e-05, %v151_v2 }
 0x197   :  { %2158 = vrsqrt.f32 %v153_v3  ;;  %vm161_vm4 = vweird.f32 %v153_v3 }
 0x19a   :  { %v150_v4 = vpop.xlane.xlu1 %149 }
 0x19b   :  { %v152_v5 = vmul.f32 %v150_v4, %v2479_v54 }
 0x19d   :  { %v2159_v6 = vpop.eup %2158  ;;  %v154_v7 = vadd.f32 1e-05, %v152_v5 }
 0x19e   :  { %v156_v8 = vmul.f32 %v2159_v6, %v153_v3  ;;  %vm162_vm3 = vweird.f32 %v2159_v6  ;;  %v238_v3 = vperm.slane %v2532_v59, 1 }
 0x19f   :  { %2160 = vrsqrt.f32 %v154_v7  ;;  %vm163_vm5 = vmor %vm161_vm4, %vm162_vm3  ;;  %vm171_vm7 = vweird.f32 %v154_v7  ;;  %vm311_vm3 = vcmask 80896   ;;  %vm315_vm4 = vcmask 74752  }
 0x1a0   :  { %v157_v9 = vmul.f32 %v2159_v6, %v156_v8 }
 0x1a2   :  { %v158_v10 = vmul.f32 0.5, %v157_v9 }
 0x1a4   :  { %v159_v11 = vsub.f32 1.5, %v158_v10 }
 0x1a5   :  { %v2161_v13 = vpop.eup %2160 }
 0x1a6   :  { %v160_v14 = vmul.f32 %v2159_v6, %v159_v11  ;;  %v166_v15 = vmul.f32 %v2161_v13, %v154_v7  ;;  %vm172_vm6 = vweird.f32 %v2161_v13 }
 0x1a7   :  { %vm173_vm8 = vmor %vm171_vm7, %vm172_vm6 }
 0x1a8   :  { %v164_v17 = vsel %vm163_vm5, %v2159_v6, %v160_v14  ;;  %v167_v18 = vmul.f32 %v2161_v13, %v166_v15 }
 0x1a9   :  { %v175_v19 = vmul.f32 %v164_v17, %v141_v57 }
 0x1aa   :  { %v168_v21 = vmul.f32 0.5, %v167_v18 }
 0x1ab   :  { %v178_v22 = vmul.f32 %v177_v16, %v175_v19 }
 0x1ac   :  { %v169_v23 = vsub.f32 1.5, %v168_v21 }
 0x1ad   :  { %v2490_v24 = vadd.f32 %v180_v20, %v178_v22 }
 0x1ae   :  { %v170_v25 = vmul.f32 %v2161_v13, %v169_v23 }
 0x1af   :  { %v191_v26 = vsel %vm124_vm0, %v2490_v24, 0.0 }
 0x1b0   :  { %v174_v27 = vsel %vm173_vm8, %v2161_v13, %v170_v25  ;;  %192 = vadd.xlane.f32.xlu2 %v191_v26  ;;  %v2541_v13 = vld [vmem:[%s3090_s7] ss:$0 sm:$0xff] }
 0x1b1   :  { %v176_v28 = vmul.f32 %v174_v27, %v142_v62  ;;  %v2581_v26 = vld [vmem:[%s3086_s3] sm:$0xff] }
 0x1b3   :  { %v179_v29 = vmul.f32 %v177_v16, %v176_v28 }
 0x1b5   :  { %v2494_v30 = vadd.f32 %v180_v20, %v179_v29 }
 0x1b7   :  { %v194_v31 = vsel %vm128_vm1, %v2494_v30, 0.0 }
 0x1b8   :  { %195 = vadd.xlane.f32.xlu2 %v194_v31  ;;  %v2588_v31 = vld [vmem:[%s3086_s3 + $0x8] sm:$0x3] }
 0x223   :  { %v193_v32 = vpop.xlane.xlu2 %192 }
 0x224   :  { %v197_v33 = vmul.f32 %v193_v32, %v2479_v54 }
 0x226   :  { %v199_v34 = vsub.f32 %v2490_v24, %v197_v33 }
 0x228   :  { %v201_v35 = vmul.f32 %v199_v34, %v199_v34 }
 0x22a   :  { %v203_v36 = vsel %vm124_vm0, %v201_v35, 0.0 }
 0x22b   :  { %204 = vadd.xlane.f32.xlu0 %v203_v36  ;;  %v196_v37 = vpop.xlane.xlu2 %195 }
 0x22c   :  { %v198_v38 = vmul.f32 %v196_v37, %v2479_v54 }
 0x22e   :  { %v200_v39 = vsub.f32 %v2494_v30, %v198_v38 }
 0x230   :  { %v202_v40 = vmul.f32 %v200_v39, %v200_v39 }
 0x232   :  { %v206_v41 = vsel %vm128_vm1, %v202_v40, 0.0 }
 0x233   :  { %207 = vadd.xlane.f32.xlu1 %v206_v41 }
 0x29e   :  { %v205_v47 = vpop.xlane.xlu0 %204 }
 0x29f   :  { %v209_v48 = vmul.f32 %v205_v47, %v2479_v54 }
 0x2a1   :  { %v211_v49 = vadd.f32 1e-05, %v209_v48 }
 0x2a3   :  { %2162 = vrsqrt.f32 %v211_v49  ;;  %vm219_vm10 = vweird.f32 %v211_v49 }
 0x2a6   :  { %v208_v50 = vpop.xlane.xlu1 %207 }
 0x2a7   :  { %v210_v51 = vmul.f32 %v208_v50, %v2479_v54 }
 0x2a9   :  { %v2163_v52 = vpop.eup %2162  ;;  %v212_v53 = vadd.f32 1e-05, %v210_v51 }
 0x2aa   :  { %v214_v55 = vmul.f32 %v2163_v52, %v211_v49  ;;  %vm220_vm9 = vweird.f32 %v2163_v52 }
 0x2ab   :  { %2164 = vrsqrt.f32 %v212_v53  ;;  %vm221_vm11 = vmor %vm219_vm10, %vm220_vm9  ;;  %vm229_vm13 = vweird.f32 %v212_v53 }
 0x2ac   :  { %v215_v56 = vmul.f32 %v2163_v52, %v214_v55 }
 0x2ae   :  { %v216_v57 = vmul.f32 0.5, %v215_v56 }
 0x2b0   :  { %v217_v58 = vsub.f32 1.5, %v216_v57 }
 0x2b1   :  { %v2165_v60 = vpop.eup %2164 }
 0x2b2   :  { %v218_v61 = vmul.f32 %v2163_v52, %v217_v58  ;;  %v224_v62 = vmul.f32 %v2165_v60, %v212_v53  ;;  %vm230_vm12 = vweird.f32 %v2165_v60 }
 0x2b3   :  { %vm231_vm14 = vmor %vm229_vm13, %vm230_vm12 }
 0x2b4   :  { %v222_v0 = vsel %vm221_vm11, %v2163_v52, %v218_v61  ;;  %v225_v1 = vmul.f32 %v2165_v60, %v224_v62 }
 0x2b5   :  { %v233_v2 = vmul.f32 %v222_v0, %v199_v34 }
 0x2b6   :  { %v226_v4 = vmul.f32 0.5, %v225_v1 }
 0x2b7   :  { %v236_v5 = vmul.f32 %v235_v63, %v233_v2 }
 0x2b8   :  { %v227_v6 = vsub.f32 1.5, %v226_v4 }
 0x2b9   :  { %v239_v7 = vadd.f32 %v238_v3, %v236_v5 }
 0x2ba   :  { %v228_v8 = vmul.f32 %v2165_v60, %v227_v6 }
 0x2bb   :  { %2026 = vmatmul.msk.f32.vlgmr.msra.gmra.mxu2 %vm124_vm0, %v239_v7 }
 0x2bc   :  { %v232_v9 = vsel %vm231_vm14, %v2165_v60, %v228_v8 }
 0x2bd   :  { %v234_v10 = vmul.f32 %v232_v9, %v200_v39 }
 0x2bf   :  { %v237_v11 = vmul.f32 %v235_v63, %v234_v10 }
 0x2c1   :  { %v240_v12 = vadd.f32 %v238_v3, %v237_v11 }
 0x2c3   :  { %2027 = vmatmul.msk.f32.gmra.mxu2 %vm124_vm0, %v240_v12 }
 0x33e   :  { %v267_v14 = vpop.f32.mrf.mxu2 }
 0x33f   :  { %v2544_v15 = vadd.f32 %v2541_v13, %v267_v14 }
 0x341   :  { %275 = vrot.lane.b32.xlu0 %v2544_v15, %s2290_s28 }
 0x346   :  { %v270_v16 = vpop.f32.mrf.mxu2 }
 0x347   :  { %v2549_v17 = vadd.f32 %v2541_v13, %v270_v16 }
 0x349   :  { %277 = vrot.lane.b32.xlu2 %v2549_v17, %s2290_s28  ;;  %363 = vrot.lane.b32.xlu0 %v2549_v17, %s2291_s29 }
 0x351   :  { %404 = vrot.lane.b32.xlu0 %v2549_v17, %s2292_s30 }
 0x359   :  { %402 = vrot.lane.b32.xlu0 %v2544_v15, %s2292_s30 }
 0x361   :  { %398 = vrot.lane.b32.xlu0 %v2544_v15, %s2293_s1 }
 0x369   :  { %555 = vrot.lane.b32.xlu0 %v186_v45, %s2294_s12 }
 0x371   :  { %587 = vrot.lane.b32.xlu0 %v2544_v15, %s2295_s13 }
 0x379   :  { %749 = vrot.lane.b32.xlu0 %v2544_v15, %s2296_s14 }
 0x381   :  { %745 = vrot.lane.b32.xlu0 %v2544_v15, %s2297_s15 }
 0x3a3   :  { %v278_v18 = vpop.permute.xlu2 %277 }
 0x3a4   :  { %2028 = vmatpush.xpose.msk.msra.mxu3 %vm279_vm15, %v278_v18 }
 0x3b3   :  { %v276_v19 = vpop.permute.xlu0 %275 }
 0x3b4   :  { %2029 = vmatpush.xpose.msk.msra.mxu3 %vm279_vm15, %v276_v19 }
 0x3b7   :  { %2030 = vmatmul.msk.f32.vlgmr.msra.gmra.mxu3 %vm279_vm15, %v2544_v15 }
 0x3bb   :  { %v364_v20 = vpop.permute.xlu0 %363 }
 0x3bc   :  { %2032 = vmatpush.msk.msrb.mxu2 %vm372_vm2, %v364_v20 }
 0x3bf   :  { %2031 = vmatmul.msk.f32.gmra.mxu3 %vm279_vm15, %v2549_v17 }
 0x3c3   :  { %v405_v21 = vpop.permute.xlu0 %404 }
 0x3c4   :  { %2035 = vmatpush.xpose.msk.msrb.mxu3 %vm279_vm15, %v405_v21 }
 0x3cb   :  { %v403_v22 = vpop.permute.xlu0 %402 }
 0x3cc   :  { %2036 = vmatpush.xpose.msk.msrb.mxu3 %vm279_vm15, %v403_v22 }
 0x3d3   :  { %v399_v23 = vpop.permute.xlu0 %398 }
 0x3d4   :  { %2037 = vmatmul.msk.f32.vlgmr.msrb.gmra.mxu3 %vm279_vm15, %v399_v23 }
 0x3db   :  { %v556_v25 = vpop.permute.xlu0 %555 }
 0x3dc   :  { %579 = vmatpush.msrb.mxu0 %v556_v25 }
 0x3e3   :  { %v588_v20 = vpop.permute.xlu0 %587 }
 0x3eb   :  { %v750_v23 = vpop.permute.xlu0 %749 }
 0x43a   :  { %v305_v27 = vpop.f32.mrf.mxu3 }
 0x43b   :  { %v306_v28 = vadd.f32 %v305_v27, %v2581_v26 }
 0x43d   :  { %v312_v29 = vsel %vm311_vm3, %v306_v28, -inf }
 0x43e   :  { %313 = vmax.xlane.f32.xlu1 %v312_v29 }
 0x442   :  { %v308_v32 = vpop.f32.mrf.mxu3 }
 0x443   :  { %v309_v33 = vadd.f32 %v308_v32, %v2588_v31 }
 0x445   :  { %v316_v34 = vsel %vm315_vm4, %v309_v33, -inf }
 0x446   :  { %317 = vmax.xlane.f32.xlu1 %v316_v34  ;;  %v746_v34 = vpop.permute.xlu0 %745 }
 0x457   :  { %v431_v49 = vpop.f32.mrf.mxu3 }
 0x458   :  { %v2609_v50 = vadd.f32 %v431_v49, %v2581_v26 }
 0x45a   :  { %v437_v51 = vsel %vm311_vm3, %v2609_v50, -inf }
 0x4b1   :  { %v314_v35 = vpop.xlane.xlu1 %313 }
 0x4b2   :  { %v319_v36 = vsub.f32 %v306_v28, %v314_v35 }
 0x4b4   :  { %v321_v37 = vmul.f32 1.442695, %v319_v36 }
 0x4b6   :  { %2166 = vpow2.f32 %v321_v37 }
 0x4b9   :  { %v318_v38 = vpop.xlane.xlu1 %317 }
 0x4ba   :  { %v320_v39 = vsub.f32 %v309_v33, %v318_v38 }
 0x4bc   :  { %v2167_v40 = vpop.eup %2166  ;;  %v323_v41 = vmul.f32 1.442695, %v320_v39 }
 0x4bd   :  { %v325_v45 = vsel %vm311_vm3, %v2167_v40, 0.0 }
 0x4be   :  { %2168 = vpow2.f32 %v323_v41  ;;  %326 = vadd.xlane.f32.xlu1 %v325_v45 }
 0x4c4   :  { %v2169_v47 = vpop.eup %2168 }
 0x4c5   :  { %v328_v48 = vsel %vm315_vm4, %v2169_v47, 0.0 }
 0x4c6   :  { %329 = vadd.xlane.f32.xlu2 %v328_v48 }
 0x4d7   :  { %361 = vrot.lane.b32.xlu1 %v2544_v15, %s2291_s29 }
 0x4de   :  { %591 = vrot.lane.b32.xlu2 %v2544_v15, %s2298_s18 }
 0x4df   :  { %400 = vrot.lane.b32.xlu1 %v2549_v17, %s2293_s1 }
 0x4e7   :  { %593 = vrot.lane.b32.xlu1 %v2549_v17, %s2298_s18 }
 0x4ef   :  { %751 = vrot.lane.b32.xlu1 %v2549_v17, %s2296_s14 }
 0x4f7   :  { %589 = vrot.lane.b32.xlu1 %v2549_v17, %s2295_s13 }
 0x4ff   :  { %747 = vrot.lane.b32.xlu1 %v2549_v17, %s2297_s15 }
 0x507   :  { %438 = vmax.xlane.f32.xlu2 %v437_v51 }
 0x531   :  { %v327_v52 = vpop.xlane.xlu1 %326 }
 0x532   :  { %2170 = vrcp.f32 %v327_v52  ;;  %v342_v62 = vand.u32 2147483648, %v327_v52  ;;  %vm336_vm6 = vweird.f32 %v327_v52  ;;  %v340_v63 = vand.u32 2147483647, %v327_v52 }
 0x534   :  { %v343_v3 = vor.u32 1.1754944e-38, %v342_v62  ;;  %vm341_vm8 = vcmp.eq.f32.partialorder %v340_v63, 8.507059e+37 }
 0x538   :  { %v2171_v53 = vpop.eup %2170 }
 0x539   :  { %v332_v55 = vmul.f32 %v2171_v53, %v327_v52  ;;  %v330_v56 = vpop.xlane.xlu2 %329  ;;  %vm337_vm5 = vweird.f32 %v2171_v53 }
 0x53a   :  { %2172 = vrcp.f32 %v330_v56  ;;  %vm338_vm7 = vmor %vm336_vm6, %vm337_vm5  ;;  %v357_v7 = vand.u32 2147483648, %v330_v56  ;;  %vm351_vm10 = vweird.f32 %v330_v56  ;;  %v355_v10 = vand.u32 2147483647, %v330_v56 }
 0x53b   :  { %v333_v57 = vsub.f32 1.0, %v332_v55 }
 0x53c   :  { %v358_v12 = vor.u32 1.1754944e-38, %v357_v7  ;;  %vm356_vm12 = vcmp.eq.f32.partialorder %v355_v10, 8.507059e+37 }
 0x53d   :  { %v334_v58 = vmul.f32 %v2171_v53, %v333_v57 }
 0x53f   :  { %v335_v60 = vadd.f32 %v2171_v53, %v334_v58 }
 0x540   :  { %v2173_v61 = vpop.eup %2172 }
 0x541   :  { %v347_v0 = vmul.f32 %v2173_v61, %v330_v56  ;;  %v339_v2 = vsel %vm338_vm7, %v2171_v53, %v335_v60  ;;  %vm352_vm9 = vweird.f32 %v2173_v61  ;;  %v592_v21 = vpop.permute.xlu2 %591 }
 0x542   :  { %v344_v5 = vsel %vm341_vm8, %v343_v3, %v339_v2  ;;  %vm353_vm11 = vmor %vm351_vm10, %vm352_vm9 }
 0x543   :  { %v348_v1 = vsub.f32 1.0, %v347_v0  ;;  %v345_v9 = vmul.f32 %v2167_v40, %v344_v5 }
 0x545   :  { %v349_v4 = vmul.f32 %v2173_v61, %v348_v1 }
 0x547   :  { %v350_v6 = vadd.f32 %v2173_v61, %v349_v4 }
 0x549   :  { %v362_v8 = vpop.permute.xlu1 %361  ;;  %v354_v11 = vsel %vm353_vm11, %v2173_v61, %v350_v6 }
 0x54a   :  { %390 = vmatpush.msrb.mxu2 %v362_v8  ;;  %v359_v14 = vsel %vm356_vm12, %v358_v12, %v354_v11 }
 0x54b   :  { %2033 = vmatmul.msk.f32.vlgmr.msrb.gmra.mxu2 %vm311_vm3, %v345_v9  ;;  %v360_v18 = vmul.f32 %v2169_v47, %v359_v14 }
 0x551   :  { %v401_v16 = vpop.permute.xlu1 %400 }
 0x552   :  { %2038 = vmatmul.msk.f32.gmra.mxu3 %vm279_vm15, %v401_v16 }
 0x553   :  { %2034 = vmatmul.msk.f32.gmra.mxu2 %vm311_vm3, %v360_v18 }
 0x559   :  { %v594_v19 = vpop.permute.xlu1 %593 }
 0x55a   :  { %2046 = vmatpush.xpose.msk.msrb.mxu1 %vm279_vm15, %v594_v19 }
 0x55e   :  { %2047 = vmatpush.xpose.msk.msrb.mxu1 %vm279_vm15, %v592_v21 }
 0x561   :  { %v752_v22 = vpop.permute.xlu1 %751  ;;  %2048 = vmatmul.msk.f32.vlgmr.msrb.gmra.mxu1 %vm279_vm15, %v588_v20 }
 0x562   :  { %2055 = vmatpush.xpose.msk.msra.mxu0 %vm279_vm15, %v752_v22 }
 0x566   :  { %2056 = vmatpush.xpose.msk.msra.mxu0 %vm279_vm15, %v750_v23 }
 0x569   :  { %v590_v25 = vpop.permute.xlu1 %589 }
 0x56a   :  { %2049 = vmatmul.msk.f32.gmra.mxu1 %vm279_vm15, %v590_v25 }
 0x571   :  { %v748_v38 = vpop.permute.xlu1 %747 }
 0x57a   :  { %v439_v45 = vpop.xlane.xlu2 %438 }
 0x57b   :  { %v443_v47 = vsub.f32 %v2609_v50, %v439_v45 }
 0x57d   :  { %v445_v48 = vmul.f32 1.442695, %v443_v47 }
 0x57f   :  { %2174 = vpow2.f32 %v445_v48 }
 0x585   :  { %v2635_v49 = vpop.eup %2174 }
 0x586   :  { %v449_v51 = vsel %vm311_vm3, %v2635_v49, 0.0 }
 0x5ce   :  { %v392_v27 = vpop.f32.mrf.mxu2 }
 0x5cf   :  { %2044 = vmatmul.msk.f32.vlgmr.msrb.gmra.mxu0 %vm279_vm15, %v392_v27 }
 0x5d5   :  { %v434_v28 = vpop.f32.mrf.mxu3 }
 0x5d6   :  { %v435_v29 = vadd.f32 %v434_v28, %v2588_v31  ;;  %v395_v32 = vpop.f32.mrf.mxu2 }
 0x5d7   :  { %2045 = vmatmul.msk.f32.gmra.mxu0 %vm279_vm15, %v395_v32 }
 0x5d8   :  { %v440_v33 = vsel %vm315_vm4, %v435_v29, -inf }
 0x5d9   :  { %441 = vmax.xlane.f32.xlu0 %v440_v33 }
 0x5de   :  { %v620_v35 = vpop.f32.mrf.mxu1 }
 0x5df   :  { %v621_v36 = vadd.f32 %v620_v35, %v2581_v26  ;;  %2057 = vmatmul.msk.f32.vlgmr.msra.gmra.mxu0 %vm279_vm15, %v746_v34 }
 0x5e1   :  { %v626_v37 = vsel %vm311_vm3, %v621_v36, -inf }
 0x5e2   :  { %627 = vmax.xlane.f32.xlu1 %v626_v37 }
 0x5e7   :  { %v623_v39 = vpop.f32.mrf.mxu1  ;;  %2058 = vmatmul.msk.f32.gmra.mxu0 %vm279_vm15, %v748_v38 }
 0x5e8   :  { %v624_v40 = vadd.f32 %v623_v39, %v2588_v31 }
 0x5ea   :  { %v629_v41 = vsel %vm315_vm4, %v624_v40, -inf }
 0x5eb   :  { %630 = vmax.xlane.f32.xlu2 %v629_v41 }
 0x5fb   :  { %487 = vrot.lane.b32.xlu1 %v2549_v17, %s2299_s19 }
 0x625   :  { %450 = vadd.xlane.f32.xlu1 %v449_v51 }
 0x63e   :  { %674 = vrot.lane.b32.xlu1 %v2544_v15, %s2300_s20 }
 0x646   :  { %834 = vrot.lane.b32.xlu1 %v2549_v17, %s2301_s21 }
 0x64c   :  { %v2643_v52 = vpop.f32.mrf.mxu0  ;;  %v442_v53 = vpop.xlane.xlu0 %441 }
 0x64d   :  { %v444_v50 = vsub.f32 %v435_v29, %v442_v53 }
 0x64e   :  { %832 = vrot.lane.b32.xlu1 %v2544_v15, %s2301_s21 }
 0x64f   :  { %v447_v55 = vmul.f32 1.442695, %v444_v50 }
 0x651   :  { %2176 = vpow2.f32 %v447_v55 }
 0x654   :  { %v2647_v56 = vpop.f32.mrf.mxu0 }
 0x655   :  { %v628_v57 = vpop.xlane.xlu1 %627 }
 0x656   :  { %v632_v58 = vsub.f32 %v621_v36, %v628_v57  ;;  %2148 = vrot.lane.b32.xlu1 %v2147_v46, %s2294_s12 }
 0x657   :  { %v2653_v60 = vpop.eup %2176 }
 0x658   :  { %v634_v61 = vmul.f32 1.442695, %v632_v58  ;;  %v452_v62 = vsel %vm315_vm4, %v2653_v60, 0.0 }
 0x659   :  { %453 = vadd.xlane.f32.xlu0 %v452_v62 }
 0x65a   :  { %2178 = vpow2.f32 %v634_v61 }
 0x65c   :  { %v778_v63 = vpop.f32.mrf.mxu0 }
 0x65d   :  { %v779_v0 = vadd.f32 %v778_v63, %v2581_v26 }
 0x65e   :  { %v631_v1 = vpop.xlane.xlu2 %630 }
 0x65f   :  { %v784_v2 = vsel %vm311_vm3, %v779_v0, -inf  ;;  %v633_v4 = vsub.f32 %v624_v40, %v631_v1 }
 0x660   :  { %v2659_v3 = vpop.eup %2178 }
 0x661   :  { %785 = vmax.xlane.f32.xlu0 %v784_v2  ;;  %v638_v42 = vsel %vm311_vm3, %v2659_v3, 0.0  ;;  %v636_v43 = vmul.f32 1.442695, %v633_v4 }
 0x662   :  { %639 = vadd.xlane.f32.xlu2 %v638_v42 }
 0x663   :  { %2180 = vpow2.f32 %v636_v43 }
 0x664   :  { %v781_v46 = vpop.f32.mrf.mxu0 }
 0x665   :  { %v782_v5 = vadd.f32 %v781_v46, %v2588_v31 }
 0x667   :  { %v787_v6 = vsel %vm315_vm4, %v782_v5, -inf }
 0x669   :  { %v2665_v7 = vpop.eup %2180 }
 0x66a   :  { %788 = vmax.xlane.f32.xlu2 %v787_v6  ;;  %v641_v8 = vsel %vm315_vm4, %v2665_v7, 0.0 }
 0x66d   :  { %v488_v26 = vpop.permute.xlu1 %487 }
 0x66e   :  { %2039 = vmatpush.msk.msra.mxu2 %vm372_vm2, %v488_v26 }
 0x672   :  { %642 = vadd.xlane.f32.xlu2 %v641_v8 }
 0x675   :  { %485 = vrot.lane.b32.xlu0 %v2544_v15, %s2299_s19 }
 0x698   :  { %v451_v9 = vpop.xlane.xlu1 %450 }
 0x699   :  { %2182 = vrcp.f32 %v451_v9  ;;  %v466_v32 = vand.u32 2147483648, %v451_v9  ;;  %vm460_vm14 = vweird.f32 %v451_v9  ;;  %v464_v35 = vand.u32 2147483647, %v451_v9 }
 0x69b   :  { %v467_v40 = vor.u32 1.1754944e-38, %v466_v32  ;;  %vm465_vm6 = vcmp.eq.f32.partialorder %v464_v35, 8.507059e+37 }
 0x69f   :  { %v2183_v14 = vpop.eup %2182 }
 0x6a0   :  { %v456_v16 = vmul.f32 %v2183_v14, %v451_v9  ;;  %vm461_vm13 = vweird.f32 %v2183_v14 }
 0x6a1   :  { %vm462_vm5 = vmor %vm460_vm14, %vm461_vm13 }
 0x6a2   :  { %v457_v19 = vsub.f32 1.0, %v456_v16 }
 0x6a4   :  { %v458_v23 = vmul.f32 %v2183_v14, %v457_v19 }
 0x6a6   :  { %v459_v27 = vadd.f32 %v2183_v14, %v458_v23 }
 0x6a8   :  { %v463_v38 = vsel %vm462_vm5, %v2183_v14, %v459_v27 }
 0x6a9   :  { %v468_v41 = vsel %vm465_vm6, %v467_v40, %v463_v38 }
 0x6aa   :  { %v469_v51 = vmul.f32 %v2635_v49, %v468_v41 }
 0x6b0   :  { %v2672_v10 = vpop.permute.xlu1 %674 }
 0x6b8   :  { %v835_v31 = vpop.permute.xlu1 %834 }
 0x6b9   :  { %2059 = vmatpush.msk.msra.mxu1 %vm372_vm2, %v835_v31 }
 0x6c0   :  { %v833_v11 = vpop.permute.xlu1 %832 }
 0x6c1   :  { %860 = vmatpush.msra.mxu1 %v833_v11 }
 0x6c8   :  { %v2149_v26 = vpop.permute.xlu1 %2148 }
 0x6cc   :  { %v454_v12 = vpop.xlane.xlu0 %453 }
 0x6cd   :  { %2184 = vrcp.f32 %v454_v12  ;;  %v481_v47 = vand.u32 2147483648, %v454_v12  ;;  %vm475_vm8 = vweird.f32 %v454_v12  ;;  %v479_v53 = vand.u32 2147483647, %v454_v12 }
 0x6cf   :  { %v482_v58 = vor.u32 1.1754944e-38, %v481_v47  ;;  %vm480_vm10 = vcmp.eq.f32.partialorder %v479_v53, 8.507059e+37 }
 0x6d3   :  { %v2185_v22 = vpop.eup %2184 }
 0x6d4   :  { %v786_v18 = vpop.xlane.xlu0 %785  ;;  %v471_v25 = vmul.f32 %v2185_v22, %v454_v12  ;;  %vm476_vm7 = vweird.f32 %v2185_v22 }
 0x6d5   :  { %v790_v20 = vsub.f32 %v779_v0, %v786_v18  ;;  %v2675_v21 = vpop.xlane.xlu2 %639  ;;  %vm477_vm9 = vmor %vm475_vm8, %vm476_vm7  ;;  %v2151_v18 = vunpack.i.h.bf16 %v2149_v26 }
 0x6d6   :  { %v472_v28 = vsub.f32 1.0, %v471_v25  ;;  %vm649_vm12 = vweird.f32 %v2675_v21 }
 0x6d7   :  { %v792_v15 = vmul.f32 1.442695, %v790_v20 }
 0x6d8   :  { %v473_v39 = vmul.f32 %v2185_v22, %v472_v28 }
 0x6d9   :  { %2186 = vpow2.f32 %v792_v15 }
 0x6da   :  { %v474_v45 = vadd.f32 %v2185_v22, %v473_v39 }
 0x6dc   :  { %v478_v57 = vsel %vm477_vm9, %v2185_v22, %v474_v45 }
 0x6dd   :  { %v789_v29 = vpop.xlane.xlu2 %788  ;;  %v483_v61 = vsel %vm480_vm10, %v482_v58, %v478_v57 }
 0x6de   :  { %v791_v33 = vsub.f32 %v782_v5, %v789_v29  ;;  %v484_v62 = vmul.f32 %v2653_v60, %v483_v61  ;;  %v2150_v29 = vunpack.i.l.bf16 %v2149_v26 }
 0x6df   :  { %v2677_v34 = vpop.eup %2186 }
 0x6e0   :  { %v794_v36 = vmul.f32 1.442695, %v791_v33  ;;  %v796_v37 = vsel %vm311_vm3, %v2677_v34, 0.0 }
 0x6e1   :  { %797 = vadd.xlane.f32.xlu2 %v796_v37 }
 0x6e2   :  { %2188 = vpow2.f32 %v794_v36 }
 0x6e3   :  { %2190 = vrcp.f32 %v2675_v21 }
 0x6e5   :  { %v643_v49 = vpop.xlane.xlu2 %642 }
 0x6e6   :  { %2192 = vrcp.f32 %v643_v49  ;;  %vm664_vm6 = vweird.f32 %v643_v49  ;;  %v670_v14 = vand.u32 2147483648, %v643_v49 }
 0x6e7   :  { %v486_v48 = vpop.permute.xlu0 %485 }
 0x6e8   :  { %v2682_v50 = vpop.eup %2188  ;;  %513 = vmatpush.msra.mxu2 %v486_v48  ;;  %v671_v27 = vor.u32 1.1754944e-38, %v670_v14 }
 0x6e9   :  { %2040 = vmatmul.msk.f32.vlgmr.msra.gmra.mxu2 %vm311_vm3, %v469_v51  ;;  %v799_v55 = vsel %vm315_vm4, %v2682_v50, 0.0  ;;  %v2191_v63 = vpop.eup %2190 }
 0x6ea   :  { %800 = vadd.xlane.f32.xlu0 %v799_v55  ;;  %v645_v0 = vmul.f32 %v2191_v63, %v2675_v21  ;;  %vm650_vm11 = vweird.f32 %v2191_v63 }
 0x6eb   :  { %vm651_vm13 = vmor %vm649_vm12, %vm650_vm11 }
 0x6ec   :  { %v646_v1 = vsub.f32 1.0, %v645_v0  ;;  %v2193_v60 = vpop.eup %2192 }
 0x6ed   :  { %v660_v4 = vmul.f32 %v2193_v60, %v643_v49  ;;  %vm665_vm5 = vweird.f32 %v2193_v60 }
 0x6ee   :  { %v647_v2 = vmul.f32 %v2191_v63, %v646_v1  ;;  %vm666_vm7 = vmor %vm664_vm6, %vm665_vm5 }
 0x6f0   :  { %v648_v42 = vadd.f32 %v2191_v63, %v647_v2 }
 0x6f1   :  { %2041 = vmatmul.msk.f32.gmra.mxu2 %vm311_vm3, %v484_v62 }
 0x6f2   :  { %v652_v46 = vsel %vm651_vm13, %v2191_v63, %v648_v42 }
 0x6f9   :  { %676 = vrot.lane.b32.xlu2 %v2549_v17, %s2300_s20  ;;  %v661_v17 = vsub.f32 1.0, %v660_v4 }
 0x6fb   :  { %v662_v5 = vmul.f32 %v2193_v60, %v661_v17 }
 0x6fd   :  { %v663_v12 = vadd.f32 %v2193_v60, %v662_v5 }
 0x6ff   :  { %v667_v25 = vsel %vm666_vm7, %v2193_v60, %v663_v12 }
 0x701   :  { %522 = vrot.lane.b32.xlu2 %v2519_v44, %s2294_s12  ;;  %v655_v44 = vand.u32 2147483648, %v2675_v21 }
 0x703   :  { %v656_v6 = vor.u32 1.1754944e-38, %v655_v44 }
 0x709   :  { %905 = vrot.lane.b32.xlu2 %v2541_v13, %s2294_s12  ;;  %v653_v13 = vand.u32 2147483647, %v2675_v21  ;;  %v668_v21 = vand.u32 2147483647, %v643_v49 }
 0x70b   :  { %vm654_vm14 = vcmp.eq.f32.partialorder %v653_v13, 8.507059e+37  ;;  %vm669_vm10 = vcmp.eq.f32.partialorder %v668_v21, 8.507059e+37  ;;  %v963_v21 = vld [vmem:[%s3091_s8 + $0x10] sm:$0xff] }
 0x70c   :  { %v657_v9 = vsel %vm654_vm14, %v656_v6, %v652_v46 }
 0x70d   :  { %v658_v20 = vmul.f32 %v2659_v3, %v657_v9  ;;  %v672_v3 = vsel %vm669_vm10, %v671_v27, %v667_v25 }
 0x70e   :  { %v673_v38 = vmul.f32 %v2665_v7, %v672_v3 }
 0x754   :  { %v798_v43 = vpop.xlane.xlu2 %797 }
 0x755   :  { %2194 = vrcp.f32 %v798_v43  ;;  %v813_v22 = vand.u32 2147483648, %v798_v43  ;;  %v811_v23 = vand.u32 2147483647, %v798_v43  ;;  %vm807_vm9 = vweird.f32 %v798_v43 }
 0x757   :  { %v814_v32 = vor.u32 1.1754944e-38, %v813_v22  ;;  %vm812_vm12 = vcmp.eq.f32.partialorder %v811_v23, 8.507059e+37  ;;  %v962_v22 = vld [vmem:[%s3091_s8 + $0x8] sm:$0xff] }
 0x75b   :  { %v2195_v8 = vpop.eup %2194 }
 0x75c   :  { %v803_v31 = vmul.f32 %v2195_v8, %v798_v43  ;;  %v677_v11 = vpop.permute.xlu2 %676  ;;  %vm808_vm8 = vweird.f32 %v2195_v8 }
 0x75d   :  { %2050 = vmatpush.msk.msrb.mxu2 %vm372_vm2, %v677_v11  ;;  %v801_v16 = vpop.xlane.xlu0 %800  ;;  %vm809_vm11 = vmor %vm807_vm9, %vm808_vm8 }
 0x75e   :  { %v804_v19 = vsub.f32 1.0, %v803_v31  ;;  %2196 = vrcp.f32 %v801_v16  ;;  %v828_v41 = vand.u32 2147483648, %v801_v16  ;;  %v826_v47 = vand.u32 2147483647, %v801_v16 }
 0x75f   :  { %702 = vmatpush.msrb.mxu2 %v2672_v10  ;;  %vm822_vm14 = vweird.f32 %v801_v16 }
 0x760   :  { %v805_v15 = vmul.f32 %v2195_v8, %v804_v19  ;;  %2051 = vmatmul.msk.f32.vlgmr.msrb.gmra.mxu2 %vm311_vm3, %v658_v20  ;;  %v829_v51 = vor.u32 1.1754944e-38, %v828_v41  ;;  %vm827_vm6 = vcmp.eq.f32.partialorder %v826_v47, 8.507059e+37  ;;  %v964_v20 = vld [vmem:[%s3091_s8 + $0x18] sm:$0xff] }
 0x761   :  { %893 = vmatpush.msra.mxu2 %v2151_v18 }
 0x762   :  { %v806_v28 = vadd.f32 %v2195_v8, %v805_v15  ;;  %v961_v15 = vld [vmem:[%s3091_s8] sm:$0xff] }
 0x764   :  { %v2197_v33 = vpop.eup %2196  ;;  %v810_v35 = vsel %vm809_vm11, %v2195_v8, %v806_v28  ;;  %v523_v10 = vpop.permute.xlu2 %522  ;;  %v2153_v28 = vld [vmem:[%s3093_s10] ss:$0 sm:$0xff] }
 0x765   :  { %v815_v36 = vsel %vm812_vm12, %v814_v32, %v810_v35  ;;  %v818_v37 = vmul.f32 %v2197_v33, %v801_v16  ;;  %546 = vmatpush.msra.mxu3 %v523_v10  ;;  %vm823_vm13 = vweird.f32 %v2197_v33 }
 0x766   :  { %v816_v39 = vmul.f32 %v2677_v34, %v815_v36  ;;  %vm824_vm5 = vmor %vm822_vm14, %vm823_vm13 }
 0x767   :  { %735 = vmatpush.msrb.mxu3 %v2150_v29  ;;  %v819_v40 = vsub.f32 1.0, %v818_v37 }
 0x768   :  { %2052 = vmatmul.msk.f32.gmra.mxu2 %vm311_vm3, %v673_v38  ;;  %2060 = vmatmul.msk.f32.vlgmr.msra.gmra.mxu1 %vm311_vm3, %v816_v39 }
 0x769   :  { %v820_v45 = vmul.f32 %v2197_v33, %v819_v40  ;;  %v954_v40 = vperm.slane %v2532_v59, 2 }
 0x76b   :  { %v821_v48 = vadd.f32 %v2197_v33, %v820_v45 }
 0x76c   :  { %v515_v53 = vpop.f32.mrf.mxu2  ;;  %v906_v42 = vpop.permute.xlu2 %905 }
 0x76d   :  { %2042 = vmatmul.msk.f32.vlgmr.msra.gmra.mxu3 %vm279_vm15, %v515_v53  ;;  %v825_v7 = vsel %vm824_vm5, %v2197_v33, %v821_v48 }
 0x76e   :  { %v830_v34 = vsel %vm827_vm6, %v829_v51, %v825_v7  ;;  %986 = vmatpush.msra.mxu3 %v964_v20  ;;  %v957_v51 = vperm.slane %v2532_v59, 3  ;;  %v1046_v59 = vld [vmem:[%s3092_s9 + $0x38] sm:$0xff] }
 0x76f   :  { %v831_v55 = vmul.f32 %v2682_v50, %v830_v34  ;;  %1065 = vmatpush.msrb.mxu0 %v1046_v59  ;;  %v2813_v59 = vld [vmem:[%s3089_s6 + $0x28] sm:$0xff] }
 0x770   :  { %987 = vmatpush.msra.mxu3 %v963_v21 }
 0x771   :  { %2061 = vmatmul.msk.f32.gmra.mxu1 %vm311_vm3, %v831_v55 }
 0x772   :  { %988 = vmatpush.msra.mxu3 %v962_v22 }
 0x774   :  { %v518_v57 = vpop.f32.mrf.mxu2  ;;  %989 = vmatpush.msra.mxu3 %v961_v15 }
 0x775   :  { %2043 = vmatmul.msk.f32.gmra.mxu3 %vm279_vm15, %v518_v57 }
 0x7e3   :  { %v704_v58 = vpop.f32.mrf.mxu2 }
 0x7e4   :  { %2053 = vmatmul.msk.f32.vlgmr.msrb.gmra.mxu3 %vm279_vm15, %v704_v58 }
 0x7e5   :  { %v862_v61 = vpop.f32.mrf.mxu1 }
 0x7e6   :  { %2062 = vmatmul.msk.f32.vlgmr.msra.gmra.mxu2 %vm279_vm15, %v862_v61 }
 0x7eb   :  { %v707_v62 = vpop.f32.mrf.mxu2 }
 0x7ec   :  { %2054 = vmatmul.msk.f32.gmra.mxu3 %vm279_vm15, %v707_v62 }
 0x7ee   :  { %v865_v49 = vpop.f32.mrf.mxu1 }
 0x7ef   :  { %2063 = vmatmul.msk.f32.gmra.mxu2 %vm279_vm15, %v865_v49 }
 0x7f0   :  { %v548_v63 = vpop.f32.mrf.mxu3 }
 0x7f1   :  { %v582_v50 = vadd.f32 %v2643_v52, %v548_v63  ;;  %v1045_v63 = vld [vmem:[%s3092_s9 + $0x30] sm:$0xff] }
 0x7f2   :  { %1066 = vmatpush.msrb.mxu0 %v1045_v63  ;;  %v2819_v63 = vld [vmem:[%s3089_s6 + $0x20] sm:$0xff] }
 0x7f8   :  { %v551_v0 = vpop.f32.mrf.mxu3 }
 0x7f9   :  { %v585_v43 = vadd.f32 %v2647_v56, %v551_v0  ;;  %v1044_v0 = vld [vmem:[%s3092_s9 + $0x28] sm:$0xff] }
 0x7fa   :  { %1067 = vmatpush.msrb.mxu0 %v1044_v0 }
 0x867   :  { %v737_v1 = vpop.f32.mrf.mxu3 }
 0x868   :  { %v743_v60 = vadd.f32 %v737_v1, %v582_v50  ;;  %v1043_v50 = vld [vmem:[%s3092_s9 + $0x20] sm:$0xff]  ;;  %v1042_v1 = vld [vmem:[%s3092_s9 + $0x18] sm:$0xff] }
 0x869   :  { %v895_v2 = vpop.f32.mrf.mxu2  ;;  %1068 = vmatpush.msrb.mxu0 %v1043_v50 }
 0x86a   :  { %v901_v4 = vadd.f32 %v895_v2, %v743_v60  ;;  %v1041_v60 = vld [vmem:[%s3092_s9 + $0x10] sm:$0xff] }
 0x86b   :  { %1069 = vmatpush.msrb.mxu0 %v1042_v1 }
 0x86c   :  { %v903_v17 = vadd.f32 %v901_v4, %v2490_v24  ;;  %v1040_v4 = vld [vmem:[%s3092_s9 + $0x8] sm:$0xff] }
 0x86d   :  { %1070 = vmatpush.msrb.mxu0 %v1041_v60 }
 0x86e   :  { %v2719_v44 = vadd.f32 %v906_v42, %v903_v17  ;;  %v1039_v17 = vld [vmem:[%s3092_s9] sm:$0xff] }
 0x86f   :  { %v740_v13 = vpop.f32.mrf.mxu3  ;;  %1071 = vmatpush.msrb.mxu0 %v1040_v4 }
 0x870   :  { %v744_v46 = vadd.f32 %v740_v13, %v585_v43  ;;  %v910_v5 = vsel %vm124_vm0, %v2719_v44, 0.0 }
 0x871   :  { %911 = vadd.xlane.f32.xlu1 %v910_v5  ;;  %1072 = vmatpush.msrb.mxu0 %v1039_v17 }
 0x872   :  { %v898_v6 = vpop.f32.mrf.mxu2 }
 0x873   :  { %v902_v26 = vadd.f32 %v898_v6, %v744_v46 }
 0x875   :  { %v904_v52 = vadd.f32 %v902_v26, %v2494_v30 }
 0x877   :  { %v2724_v8 = vadd.f32 %v906_v42, %v904_v52 }
 0x879   :  { %v913_v9 = vsel %vm128_vm1, %v2724_v8, 0.0 }
 0x87a   :  { %914 = vadd.xlane.f32.xlu2 %v913_v9 }
 0x8e4   :  { %v912_v24 = vpop.xlane.xlu1 %911 }
 0x8e5   :  { %v916_v56 = vmul.f32 %v912_v24, %v2479_v54 }
 0x8e7   :  { %v918_v31 = vsub.f32 %v2719_v44, %v916_v56 }
 0x8e9   :  { %v920_v11 = vmul.f32 %v918_v31, %v918_v31 }
 0x8eb   :  { %v922_v12 = vsel %vm124_vm0, %v920_v11, 0.0 }
 0x8ec   :  { %923 = vadd.xlane.f32.xlu0 %v922_v12 }
 0x8ed   :  { %v915_v14 = vpop.xlane.xlu2 %914 }
 0x8ee   :  { %v917_v16 = vmul.f32 %v915_v14, %v2479_v54 }
 0x8f0   :  { %v919_v30 = vsub.f32 %v2724_v8, %v917_v16 }
 0x8f2   :  { %v921_v18 = vmul.f32 %v919_v30, %v919_v30 }
 0x8f4   :  { %v925_v19 = vsel %vm128_vm1, %v921_v18, 0.0 }
 0x8f5   :  { %926 = vadd.xlane.f32.xlu0 %v925_v19 }
 0x909   :  { %1047 = vrot.lane.b32.xlu0 %v2153_v28, %s2291_s29 }
 0x95f   :  { %v924_v23 = vpop.xlane.xlu0 %923 }
 0x960   :  { %v928_v25 = vmul.f32 %v924_v23, %v2479_v54 }
 0x962   :  { %v930_v27 = vadd.f32 1e-05, %v928_v25 }
 0x964   :  { %2198 = vrsqrt.f32 %v930_v27  ;;  %vm938_vm8 = vweird.f32 %v930_v27 }
 0x968   :  { %v927_v29 = vpop.xlane.xlu0 %926 }
 0x969   :  { %v929_v32 = vmul.f32 %v927_v29, %v2479_v54 }
 0x96a   :  { %v2199_v3 = vpop.eup %2198 }
 0x96b   :  { %v933_v33 = vmul.f32 %v2199_v3, %v930_v27  ;;  %v931_v35 = vadd.f32 1e-05, %v929_v32  ;;  %vm939_vm7 = vweird.f32 %v2199_v3 }
 0x96c   :  { %vm940_vm9 = vmor %vm938_vm8, %vm939_vm7  ;;  %vm1050_vm7 = vcmask 523264  }
 0x96d   :  { %v934_v10 = vmul.f32 %v2199_v3, %v933_v33  ;;  %2200 = vrsqrt.f32 %v931_v35  ;;  %vm948_vm11 = vweird.f32 %v931_v35 }
 0x96f   :  { %v935_v36 = vmul.f32 0.5, %v934_v10 }
 0x971   :  { %v936_v37 = vsub.f32 1.5, %v935_v36 }
 0x973   :  { %v2201_v38 = vpop.eup %2200  ;;  %v937_v39 = vmul.f32 %v2199_v3, %v936_v37 }
 0x974   :  { %v943_v41 = vmul.f32 %v2201_v38, %v931_v35  ;;  %vm949_vm10 = vweird.f32 %v2201_v38 }
 0x975   :  { %v941_v45 = vsel %vm940_vm9, %v2199_v3, %v937_v39  ;;  %vm950_vm12 = vmor %vm948_vm11, %vm949_vm10 }
 0x976   :  { %v952_v47 = vmul.f32 %v941_v45, %v918_v31  ;;  %v944_v48 = vmul.f32 %v2201_v38, %v943_v41 }
 0x978   :  { %v955_v53 = vmul.f32 %v954_v40, %v952_v47  ;;  %v945_v7 = vmul.f32 0.5, %v944_v48 }
 0x97a   :  { %v946_v34 = vsub.f32 1.5, %v945_v7  ;;  %v958_v55 = vadd.f32 %v957_v51, %v955_v53 }
 0x97b   :  { %v1048_v36 = vpop.permute.xlu0 %1047 }
 0x97c   :  { %v947_v57 = vmul.f32 %v2201_v38, %v946_v34  ;;  %2064 = vmatmul.msk.f32.vlgmr.msra.gmra.mxu3 %vm124_vm0, %v958_v55 }
 0x97e   :  { %v951_v58 = vsel %vm950_vm12, %v2201_v38, %v947_v57 }
 0x97f   :  { %v953_v61 = vmul.f32 %v951_v58, %v919_v30 }
 0x981   :  { %v956_v62 = vmul.f32 %v954_v40, %v953_v61 }
 0x983   :  { %v959_v49 = vadd.f32 %v957_v51, %v956_v62  ;;  %v2801_v62 = vld [vmem:[%s3089_s6 + $0x38] sm:$0xff] }
 0x984   :  { %1162 = vmatpush.msrb.mxu1 %v2801_v62 }
 0x985   :  { %2065 = vmatmul.msk.f32.gmra.mxu3 %vm124_vm0, %v959_v49  ;;  %v2807_v49 = vld [vmem:[%s3089_s6 + $0x30] sm:$0xff] }
 0x986   :  { %1163 = vmatpush.msrb.mxu1 %v2807_v49 }
 0x988   :  { %1164 = vmatpush.msrb.mxu1 %v2813_v59 }
 0x98a   :  { %1165 = vmatpush.msrb.mxu1 %v2819_v63 }
 0x9ff   :  { %v991_v2 = vpop.f32.mrf.mxu3 }
 0xa00   :  { %v992_v42 = vadd.f32 %v2153_v28, %v991_v2 }
 0xa02   :  { %v2066_v43 = vmul.f32 -1.702, %v992_v42 }
 0xa04   :  { %v1001_v13 = vmul.f32 1.442695, %v2066_v43 }
 0xa06   :  { %2202 = vpow2.f32 %v1001_v13 }
 0xa08   :  { %v994_v46 = vpop.f32.mrf.mxu3 }
 0xa09   :  { %v995_v5 = vadd.f32 %v2153_v28, %v994_v46  ;;  %v2827_v46 = vld [vmem:[%s3088_s5 + $0x4] sm:$0xf] }
 0xa0b   :  { %v2067_v6 = vmul.f32 -1.702, %v995_v5 }
 0xa0c   :  { %v2203_v26 = vpop.eup %2202 }
 0xa0d   :  { %v1005_v52 = vadd.f32 1.0, %v2203_v26  ;;  %v1003_v9 = vmul.f32 1.442695, %v2067_v6 }
 0xa0f   :  { %2204 = vrcp.f32 %v1005_v52  ;;  %v1018_v14 = vand.u32 2147483648, %v1005_v52  ;;  %v1016_v30 = vand.u32 2147483647, %v1005_v52  ;;  %vm1012_vm14 = vweird.f32 %v1005_v52 }
 0xa10   :  { %2206 = vpow2.f32 %v1003_v9 }
 0xa11   :  { %v1019_v19 = vor.u32 1.1754944e-38, %v1018_v14  ;;  %vm1017_vm6 = vcmp.eq.f32.partialorder %v1016_v30, 8.507059e+37 }
 0xa15   :  { %v2205_v24 = vpop.eup %2204 }
 0xa16   :  { %v2207_v56 = vpop.eup %2206  ;;  %v1008_v31 = vmul.f32 %v2205_v24, %v1005_v52  ;;  %vm1013_vm13 = vweird.f32 %v2205_v24  ;;  %v1135_v52 = vperm.slane %v2827_v46, 0 }
 0xa17   :  { %v1006_v11 = vadd.f32 1.0, %v2207_v56  ;;  %vm1014_vm5 = vmor %vm1012_vm14, %vm1013_vm13 }
 0xa18   :  { %v1009_v12 = vsub.f32 1.0, %v1008_v31  ;;  %v1138_v31 = vperm.slane %v2827_v46, 1 }
 0xa19   :  { %2208 = vrcp.f32 %v1006_v11  ;;  %v1033_v27 = vand.u32 2147483648, %v1006_v11  ;;  %v1031_v29 = vand.u32 2147483647, %v1006_v11  ;;  %vm1027_vm9 = vweird.f32 %v1006_v11 }
 0xa1a   :  { %v1010_v16 = vmul.f32 %v2205_v24, %v1009_v12 }
 0xa1b   :  { %v1034_v3 = vor.u32 1.1754944e-38, %v1033_v27  ;;  %vm1032_vm11 = vcmp.eq.f32.partialorder %v1031_v29, 8.507059e+37 }
 0xa1c   :  { %v1011_v18 = vadd.f32 %v2205_v24, %v1010_v16 }
 0xa1e   :  { %v1015_v20 = vsel %vm1014_vm5, %v2205_v24, %v1011_v18 }
 0xa1f   :  { %v2209_v21 = vpop.eup %2208  ;;  %v1020_v22 = vsel %vm1017_vm6, %v1019_v19, %v1015_v20 }
 0xa20   :  { %v1037_v15 = vmul.f32 %v1020_v22, %v992_v42  ;;  %v1023_v23 = vmul.f32 %v2209_v21, %v1006_v11  ;;  %vm1028_vm8 = vweird.f32 %v2209_v21 }
 0xa21   :  { %vm1029_vm10 = vmor %vm1027_vm9, %vm1028_vm8 }
 0xa22   :  { %v1024_v25 = vsub.f32 1.0, %v1023_v23  ;;  %2068 = vmatmul.msk.f32.vlgmr.msrb.gmra.mxu0 %vm1050_vm7, %v1037_v15  ;;  %v2836_v15 = vld [vmem:[%s3090_s7 + $0x1] ss:$0 sm:$0xff] }
 0xa24   :  { %v1025_v28 = vmul.f32 %v2209_v21, %v1024_v25 }
 0xa26   :  { %v1026_v32 = vadd.f32 %v2209_v21, %v1025_v28 }
 0xa28   :  { %v1030_v33 = vsel %vm1029_vm10, %v2209_v21, %v1026_v32 }
 0xa29   :  { %v1035_v35 = vsel %vm1032_vm11, %v1034_v3, %v1030_v33  ;;  %v2857_v33 = vld [vmem:[%s3086_s3] sm:$0xff] }
 0xa2a   :  { %v1038_v10 = vmul.f32 %v1035_v35, %v995_v5 }
 0xa2c   :  { %2069 = vmatmul.msk.f32.gmra.mxu0 %vm1050_vm7, %v1038_v10 }
 0xa9f   :  { %v1074_v37 = vpop.f32.mrf.mxu0 }
 0xaa0   :  { %v1075_v38 = vadd.f32 %v1074_v37, %v1048_v36  ;;  %v2864_v37 = vld [vmem:[%s3086_s3 + $0x8] sm:$0x3]  ;;  %s2015_s3 = sshll.u32 %s2302_s2, 4  ;;  %s2016_s3 = int_to_ptr.vmem [resolvable:$true] %s2015_s3 }
 0xaa2   :  { %v2783_v39 = vadd.f32 %v1075_v38, %v2719_v44 }
 0xaa4   :  { %v1091_v40 = vsel %vm124_vm0, %v2783_v39, 0.0 }
 0xaa5   :  { %1092 = vadd.xlane.f32.xlu1 %v1091_v40 }
 0xaa9   :  { %v1077_v41 = vpop.f32.mrf.mxu0 }
 0xaaa   :  { %v1078_v45 = vadd.f32 %v1077_v41, %v1048_v36 }
 0xaac   :  { %v2788_v47 = vadd.f32 %v1078_v45, %v2724_v8 }
 0xaae   :  { %v1094_v48 = vsel %vm128_vm1, %v2788_v47, 0.0 }
 0xaaf   :  { %1095 = vadd.xlane.f32.xlu0 %v1094_v48 }
 0xb18   :  { %v1093_v51 = vpop.xlane.xlu1 %1092 }
 0xb19   :  { %v1097_v53 = vmul.f32 %v1093_v51, %v2479_v54 }
 0xb1b   :  { %v1099_v7 = vsub.f32 %v2783_v39, %v1097_v53 }
 0xb1d   :  { %v1101_v44 = vmul.f32 %v1099_v7, %v1099_v7 }
 0xb1f   :  { %v1103_v34 = vsel %vm124_vm0, %v1101_v44, 0.0 }
 0xb20   :  { %1104 = vadd.xlane.f32.xlu2 %v1103_v34 }
 0xb22   :  { %v1096_v55 = vpop.xlane.xlu0 %1095 }
 0xb23   :  { %v1098_v57 = vmul.f32 %v1096_v55, %v2479_v54 }
 0xb25   :  { %v1100_v58 = vsub.f32 %v2788_v47, %v1098_v57 }
 0xb27   :  { %v1102_v8 = vmul.f32 %v1100_v58, %v1100_v58 }
 0xb29   :  { %v1106_v61 = vsel %vm128_vm1, %v1102_v8, 0.0 }
 0xb2a   :  { %1107 = vadd.xlane.f32.xlu1 %v1106_v61 }
 0xb93   :  { %v1105_v0 = vpop.xlane.xlu2 %1104 }
 0xb94   :  { %v1109_v50 = vmul.f32 %v1105_v0, %v2479_v54 }
 0xb96   :  { %v1111_v1 = vadd.f32 1e-05, %v1109_v50 }
 0xb98   :  { %2210 = vrsqrt.f32 %v1111_v1  ;;  %vm1119_vm13 = vweird.f32 %v1111_v1 }
 0xb9d   :  { %v1108_v60 = vpop.xlane.xlu1 %1107 }
 0xb9e   :  { %v2211_v2 = vpop.eup %2210  ;;  %v1110_v4 = vmul.f32 %v1108_v60, %v2479_v54 }
 0xb9f   :  { %v1114_v42 = vmul.f32 %v2211_v2, %v1111_v1  ;;  %vm1120_vm12 = vweird.f32 %v2211_v2 }
 0xba0   :  { %v1112_v17 = vadd.f32 1e-05, %v1110_v4  ;;  %vm1121_vm14 = vmor %vm1119_vm13, %vm1120_vm12 }
 0xba1   :  { %v1115_v43 = vmul.f32 %v2211_v2, %v1114_v42 }
 0xba2   :  { %2212 = vrsqrt.f32 %v1112_v17  ;;  %vm1129_vm6 = vweird.f32 %v1112_v17 }
 0xba3   :  { %v1116_v13 = vmul.f32 0.5, %v1115_v43 }
 0xba5   :  { %v1117_v5 = vsub.f32 1.5, %v1116_v13 }
 0xba7   :  { %v1118_v6 = vmul.f32 %v2211_v2, %v1117_v5 }
 0xba8   :  { %v2213_v26 = vpop.eup %2212 }
 0xba9   :  { %v1122_v9 = vsel %vm1121_vm14, %v2211_v2, %v1118_v6  ;;  %v1124_v24 = vmul.f32 %v2213_v26, %v1112_v17  ;;  %vm1130_vm5 = vweird.f32 %v2213_v26 }
 0xbaa   :  { %v1133_v56 = vmul.f32 %v1122_v9, %v1099_v7  ;;  %vm1131_vm8 = vmor %vm1129_vm6, %vm1130_vm5 }
 0xbab   :  { %v1125_v11 = vmul.f32 %v2213_v26, %v1124_v24 }
 0xbac   :  { %v1136_v12 = vmul.f32 %v1135_v52, %v1133_v56 }
 0xbad   :  { %v1126_v14 = vmul.f32 0.5, %v1125_v11 }
 0xbae   :  { %v1139_v16 = vadd.f32 %v1138_v31, %v1136_v12 }
 0xbaf   :  { %v1127_v30 = vsub.f32 1.5, %v1126_v14 }
 0xbb0   :  { %2076 = vmatmul.msk.f32.vlgmr.msrb.gmra.mxu1 %vm124_vm0, %v1139_v16 }
 0xbb1   :  { %v1128_v18 = vmul.f32 %v2213_v26, %v1127_v30 }
 0xbb3   :  { %v1132_v19 = vsel %vm1131_vm8, %v2213_v26, %v1128_v18 }
 0xbb4   :  { %v1134_v20 = vmul.f32 %v1132_v19, %v1100_v58 }
 0xbb6   :  { %v1137_v21 = vmul.f32 %v1135_v52, %v1134_v20 }
 0xbb8   :  { %v1140_v22 = vadd.f32 %v1138_v31, %v1137_v21 }
 0xbba   :  { %2077 = vmatmul.msk.f32.gmra.mxu1 %vm124_vm0, %v1140_v22 }
 0xc2d   :  { %v1167_v23 = vpop.f32.mrf.mxu1 }
 0xc2e   :  { %v2839_v25 = vadd.f32 %v2836_v15, %v1167_v23 }
 0xc30   :  { %1175 = vrot.lane.b32.xlu1 %v2839_v25, %s2290_s28 }
 0xc37   :  { %v1170_v27 = vpop.f32.mrf.mxu1 }
 0xc38   :  { %v2844_v28 = vadd.f32 %v2836_v15, %v1170_v27 }
 0xc3a   :  { %1177 = vrot.lane.b32.xlu2 %v2844_v28, %s2290_s28 }
 0xc94   :  { %v1178_v29 = vpop.permute.xlu2 %1177 }
 0xc95   :  { %2078 = vmatpush.xpose.msk.msrb.mxu2 %vm279_vm15, %v1178_v29 }
 0xca2   :  { %v1176_v32 = vpop.permute.xlu1 %1175 }
 0xca3   :  { %2079 = vmatpush.xpose.msk.msrb.mxu2 %vm279_vm15, %v1176_v32 }
 0xca6   :  { %2080 = vmatmul.msk.f32.vlgmr.msrb.gmra.mxu2 %vm279_vm15, %v2839_v25 }
 0xcae   :  { %2081 = vmatmul.msk.f32.gmra.mxu2 %vm279_vm15, %v2844_v28 }
 0xd29   :  { %v1204_v3 = vpop.f32.mrf.mxu2 }
 0xd2a   :  { %v1205_v35 = vadd.f32 %v2857_v33, %v1204_v3 }
 0xd2c   :  { %v1210_v10 = vsel %vm311_vm3, %v1205_v35, -inf }
 0xd2d   :  { %1211 = vmax.xlane.f32.xlu2 %v1210_v10 }
 0xd31   :  { %v1207_v36 = vpop.f32.mrf.mxu2 }
 0xd32   :  { %v1208_v38 = vadd.f32 %v2864_v37, %v1207_v36 }
 0xd34   :  { %v1213_v40 = vsel %vm315_vm4, %v1208_v38, -inf }
 0xd35   :  { %1214 = vmax.xlane.f32.xlu1 %v1213_v40 }
 0xd45   :  { %1258 = vrot.lane.b32.xlu2 %v2839_v25, %s2291_s29 }
 0xd4d   :  { %1296 = vrot.lane.b32.xlu2 %v2844_v28, %s2293_s1 }
 0xd4e   :  { %1298 = vrot.lane.b32.xlu1 %v2839_v25, %s2292_s30 }
 0xd55   :  { %1487 = vrot.lane.b32.xlu2 %v2839_v25, %s2298_s18 }
 0xd56   :  { %1647 = vrot.lane.b32.xlu1 %v2844_v28, %s2296_s14 }
 0xd5d   :  { %1641 = vrot.lane.b32.xlu2 %v2839_v25, %s2297_s15 }
 0xd5e   :  { %1483 = vrot.lane.b32.xlu1 %v2839_v25, %s2295_s13 }
 0xd66   :  { %1643 = vrot.lane.b32.xlu1 %v2844_v28, %s2297_s15 }
 0xda0   :  { %v1212_v41 = vpop.xlane.xlu2 %1211 }
 0xda1   :  { %v1216_v45 = vsub.f32 %v1205_v35, %v1212_v41 }
 0xda3   :  { %v1218_v48 = vmul.f32 1.442695, %v1216_v45 }
 0xda5   :  { %2214 = vpow2.f32 %v1218_v48 }
 0xda8   :  { %v1215_v51 = vpop.xlane.xlu1 %1214  ;;  %v1259_v24 = vpop.permute.xlu2 %1258 }
 0xda9   :  { %v1217_v53 = vsub.f32 %v1208_v38, %v1215_v51 }
 0xdab   :  { %v2215_v7 = vpop.eup %2214  ;;  %v1220_v44 = vmul.f32 1.442695, %v1217_v53 }
 0xdac   :  { %v1222_v34 = vsel %vm311_vm3, %v2215_v7, 0.0 }
 0xdad   :  { %2216 = vpow2.f32 %v1220_v44  ;;  %1223 = vadd.xlane.f32.xlu0 %v1222_v34 }
 0xdb0   :  { %v1297_v20 = vpop.permute.xlu2 %1296 }
 0xdb3   :  { %v2217_v55 = vpop.eup %2216 }
 0xdb4   :  { %v1225_v57 = vsel %vm315_vm4, %v2217_v55, 0.0 }
 0xdb5   :  { %1226 = vadd.xlane.f32.xlu0 %v1225_v57 }
 0xdb8   :  { %v1488_v27 = vpop.permute.xlu2 %1487 }
 0xdc0   :  { %v1299_v18 = vpop.permute.xlu1 %1298  ;;  %v1642_v45 = vpop.permute.xlu2 %1641 }
 0xdc8   :  { %v1648_v22 = vpop.permute.xlu1 %1647 }
 0xdc9   :  { %1260 = vrot.lane.b32.xlu0 %v2844_v28, %s2291_s29 }
 0xdd0   :  { %v1484_v29 = vpop.permute.xlu1 %1483 }
 0xdd1   :  { %1300 = vrot.lane.b32.xlu0 %v2844_v28, %s2292_s30 }
 0xdd8   :  { %v1644_v53 = vpop.permute.xlu1 %1643 }
 0xdd9   :  { %1294 = vrot.lane.b32.xlu0 %v2839_v25, %s2293_s1 }
 0xde1   :  { %1451 = vrot.lane.b32.xlu0 %v2819_v63, %s2294_s12 }
 0xde9   :  { %1489 = vrot.lane.b32.xlu0 %v2844_v28, %s2298_s18 }
 0xdf1   :  { %1645 = vrot.lane.b32.xlu0 %v2839_v25, %s2296_s14 }
 0xdf9   :  { %1485 = vrot.lane.b32.xlu0 %v2844_v28, %s2295_s13 }
 0xe20   :  { %v1224_v58 = vpop.xlane.xlu0 %1223 }
 0xe21   :  { %2218 = vrcp.f32 %v1224_v58  ;;  %v1239_v42 = vand.u32 2147483648, %v1224_v58  ;;  %vm1233_vm10 = vweird.f32 %v1224_v58  ;;  %v1237_v17 = vand.u32 2147483647, %v1224_v58 }
 0xe23   :  { %v1240_v5 = vor.u32 1.1754944e-38, %v1239_v42  ;;  %vm1238_vm12 = vcmp.eq.f32.partialorder %v1237_v17, 8.507059e+37 }
 0xe27   :  { %v2219_v8 = vpop.eup %2218 }
 0xe28   :  { %v1229_v61 = vmul.f32 %v2219_v8, %v1224_v58  ;;  %v1227_v0 = vpop.xlane.xlu0 %1226  ;;  %vm1234_vm9 = vweird.f32 %v2219_v8 }
 0xe29   :  { %2220 = vrcp.f32 %v1227_v0  ;;  %vm1235_vm11 = vmor %vm1233_vm10, %vm1234_vm9  ;;  %v1254_v9 = vand.u32 2147483648, %v1227_v0  ;;  %vm1248_vm14 = vweird.f32 %v1227_v0  ;;  %v1252_v31 = vand.u32 2147483647, %v1227_v0 }
 0xe2a   :  { %v1230_v50 = vsub.f32 1.0, %v1229_v61 }
 0xe2b   :  { %v1255_v12 = vor.u32 1.1754944e-38, %v1254_v9  ;;  %vm1253_vm6 = vcmp.eq.f32.partialorder %v1252_v31, 8.507059e+37 }
 0xe2c   :  { %v1231_v60 = vmul.f32 %v2219_v8, %v1230_v50 }
 0xe2e   :  { %v1232_v63 = vadd.f32 %v2219_v8, %v1231_v60 }
 0xe2f   :  { %v2221_v1 = vpop.eup %2220 }
 0xe30   :  { %v1244_v2 = vmul.f32 %v2221_v1, %v1227_v0  ;;  %v1236_v43 = vsel %vm1235_vm11, %v2219_v8, %v1232_v63  ;;  %vm1249_vm13 = vweird.f32 %v2221_v1 }
 0xe31   :  { %v1241_v6 = vsel %vm1238_vm12, %v1240_v5, %v1236_v43  ;;  %vm1250_vm5 = vmor %vm1248_vm14, %vm1249_vm13 }
 0xe32   :  { %v1245_v4 = vsub.f32 1.0, %v1244_v2  ;;  %v1242_v56 = vmul.f32 %v2215_v7, %v1241_v6 }
 0xe34   :  { %v1246_v13 = vmul.f32 %v2221_v1, %v1245_v4 }
 0xe36   :  { %v1247_v52 = vadd.f32 %v2221_v1, %v1246_v13 }
 0xe38   :  { %v1251_v11 = vsel %vm1250_vm5, %v2221_v1, %v1247_v52 }
 0xe39   :  { %v1256_v14 = vsel %vm1253_vm6, %v1255_v12, %v1251_v11 }
 0xe3a   :  { %v1257_v30 = vmul.f32 %v2217_v55, %v1256_v14 }
 0xe3b   :  { %v1261_v26 = vpop.permute.xlu0 %1260 }
 0xe3c   :  { %2082 = vmatpush.msk.msrb.mxu3 %vm372_vm2, %v1261_v26 }
 0xe3e   :  { %1286 = vmatpush.msrb.mxu3 %v1259_v24 }
 0xe3f   :  { %2083 = vmatmul.msk.f32.vlgmr.msrb.gmra.mxu3 %vm311_vm3, %v1242_v56 }
 0xe43   :  { %v1301_v16 = vpop.permute.xlu0 %1300 }
 0xe44   :  { %2085 = vmatpush.xpose.msk.msra.mxu0 %vm279_vm15, %v1301_v16 }
 0xe47   :  { %2084 = vmatmul.msk.f32.gmra.mxu3 %vm311_vm3, %v1257_v30 }
 0xe48   :  { %2086 = vmatpush.xpose.msk.msra.mxu0 %vm279_vm15, %v1299_v18 }
 0xe4b   :  { %v1295_v19 = vpop.permute.xlu0 %1294 }
 0xe4c   :  { %2087 = vmatmul.msk.f32.vlgmr.msra.gmra.mxu0 %vm279_vm15, %v1295_v19 }
 0xe53   :  { %v1452_v21 = vpop.permute.xlu0 %1451 }
 0xe54   :  { %2088 = vmatmul.msk.f32.gmra.mxu0 %vm279_vm15, %v1297_v20  ;;  %1475 = vmatpush.msra.mxu3 %v1452_v21 }
 0xe56   :  { %2105 = vmatpush.xpose.msk.msrb.mxu3 %vm279_vm15, %v1648_v22 }
 0xe5b   :  { %v1490_v23 = vpop.permute.xlu0 %1489 }
 0xe5c   :  { %2096 = vmatpush.xpose.msk.msrb.mxu0 %vm279_vm15, %v1490_v23 }
 0xe60   :  { %2097 = vmatpush.xpose.msk.msrb.mxu0 %vm279_vm15, %v1488_v27 }
 0xe63   :  { %v1646_v32 = vpop.permute.xlu0 %1645  ;;  %2098 = vmatmul.msk.f32.vlgmr.msrb.gmra.mxu0 %vm279_vm15, %v1484_v29 }
 0xe64   :  { %2106 = vmatpush.xpose.msk.msrb.mxu3 %vm279_vm15, %v1646_v32 }
 0xe6b   :  { %v1486_v3 = vpop.permute.xlu0 %1485 }
 0xe6c   :  { %2099 = vmatmul.msk.f32.gmra.mxu0 %vm279_vm15, %v1486_v3 }
 0xec2   :  { %v1288_v35 = vpop.f32.mrf.mxu3 }
 0xec3   :  { %2094 = vmatmul.msk.f32.vlgmr.msra.gmra.mxu3 %vm279_vm15, %v1288_v35 }
 0xec9   :  { %v1327_v10 = vpop.f32.mrf.mxu0 }
 0xeca   :  { %v1328_v36 = vadd.f32 %v2857_v33, %v1327_v10  ;;  %v1291_v38 = vpop.f32.mrf.mxu3 }
 0xecb   :  { %2095 = vmatmul.msk.f32.gmra.mxu3 %vm279_vm15, %v1291_v38 }
 0xecc   :  { %v1333_v40 = vsel %vm311_vm3, %v1328_v36, -inf }
 0xecd   :  { %1334 = vmax.xlane.f32.xlu2 %v1333_v40 }
 0xed1   :  { %v1330_v41 = vpop.f32.mrf.mxu0 }
 0xed2   :  { %v1331_v48 = vadd.f32 %v2864_v37, %v1330_v41 }
 0xed3   :  { %2107 = vmatmul.msk.f32.vlgmr.msrb.gmra.mxu3 %vm279_vm15, %v1642_v45 }
 0xed4   :  { %v1336_v51 = vsel %vm315_vm4, %v1331_v48, -inf }
 0xed5   :  { %1337 = vmax.xlane.f32.xlu0 %v1336_v51 }
 0xedb   :  { %2108 = vmatmul.msk.f32.gmra.mxu3 %vm279_vm15, %v1644_v53 }
 0xee0   :  { %v1516_v7 = vpop.f32.mrf.mxu0 }
 0xee1   :  { %v1517_v44 = vadd.f32 %v2857_v33, %v1516_v7 }
 0xee3   :  { %v1522_v34 = vsel %vm311_vm3, %v1517_v44, -inf }
 0xee4   :  { %1523 = vmax.xlane.f32.xlu1 %v1522_v34 }
 0xf40   :  { %v1335_v55 = vpop.xlane.xlu2 %1334 }
 0xf41   :  { %v1339_v57 = vsub.f32 %v1328_v36, %v1335_v55 }
 0xf43   :  { %v1341_v58 = vmul.f32 1.442695, %v1339_v57 }
 0xf45   :  { %2222 = vpow2.f32 %v1341_v58 }
 0xf46   :  { %v2923_v8 = vpop.f32.mrf.mxu3 }
 0xf48   :  { %v1338_v61 = vpop.xlane.xlu0 %1337 }
 0xf49   :  { %v1340_v0 = vsub.f32 %v1331_v48, %v1338_v61 }
 0xf4b   :  { %v2925_v50 = vpop.eup %2222  ;;  %v1343_v1 = vmul.f32 1.442695, %v1340_v0 }
 0xf4c   :  { %v1345_v60 = vsel %vm311_vm3, %v2925_v50, 0.0 }
 0xf4d   :  { %2224 = vpow2.f32 %v1343_v1  ;;  %1346 = vadd.xlane.f32.xlu0 %v1345_v60 }
 0xf4e   :  { %v2929_v2 = vpop.f32.mrf.mxu3 }
 0xf53   :  { %v2931_v63 = vpop.eup %2224 }
 0xf54   :  { %v1348_v4 = vsel %vm315_vm4, %v2931_v63, 0.0 }
 0xf55   :  { %1349 = vadd.xlane.f32.xlu1 %v1348_v4 }
 0xf56   :  { %v1674_v42 = vpop.f32.mrf.mxu3 }
 0xf57   :  { %v1675_v17 = vadd.f32 %v2857_v33, %v1674_v42  ;;  %v1524_v43 = vpop.xlane.xlu1 %1523  ;;  %v1519_v33 = vpop.f32.mrf.mxu0 }
 0xf58   :  { %v1528_v13 = vsub.f32 %v1517_v44, %v1524_v43  ;;  %v2952_v9 = vadd.f32 %v2864_v37, %v1519_v33 }
 0xf59   :  { %v1680_v5 = vsel %vm311_vm3, %v1675_v17, -inf }
 0xf5a   :  { %v1530_v6 = vmul.f32 1.442695, %v1528_v13  ;;  %1681 = vmax.xlane.f32.xlu2 %v1680_v5  ;;  %v1525_v56 = vsel %vm315_vm4, %v2952_v9, -inf }
 0xf5c   :  { %2226 = vpow2.f32 %v1530_v6 }
 0xf5e   :  { %v1677_v24 = vpop.f32.mrf.mxu3 }
 0xf5f   :  { %v2957_v31 = vadd.f32 %v2864_v37, %v1677_v24 }
 0xf61   :  { %1383 = vrot.lane.b32.xlu0 %v2844_v28, %s2299_s19  ;;  %v1683_v11 = vsel %vm315_vm4, %v2957_v31, -inf }
 0xf62   :  { %v2939_v26 = vpop.eup %2226 }
 0xf63   :  { %v1534_v52 = vsel %vm311_vm3, %v2939_v26, 0.0 }
 0xf64   :  { %1535 = vadd.xlane.f32.xlu2 %v1534_v52 }
 0xf69   :  { %1570 = vrot.lane.b32.xlu0 %v2839_v25, %s2300_s20 }
 0xf6e   :  { %1381 = vrot.lane.b32.xlu1 %v2839_v25, %s2299_s19 }
 0xf71   :  { %1730 = vrot.lane.b32.xlu0 %v2844_v28, %s2301_s21 }
 0xf76   :  { %1728 = vrot.lane.b32.xlu1 %v2839_v25, %s2301_s21 }
 0xf9b   :  { %1526 = vmax.xlane.f32.xlu0 %v1525_v56 }
 0xfa0   :  { %1684 = vmax.xlane.f32.xlu1 %v1683_v11 }
 0xfaf   :  { %1418 = vrot.lane.b32.xlu0 %v2813_v59, %s2294_s12 }
 0xfb7   :  { %1801 = vrot.lane.b32.xlu0 %v2836_v15, %s2294_s12 }
 0xfb9   :  { %1607 = vrot.lane.b32.xlu1 %v2807_v49, %s2294_s12 }
 0xfc0   :  { %v1347_v25 = vpop.xlane.xlu0 %1346 }
 0xfc1   :  { %2228 = vrcp.f32 %v1347_v25  ;;  %v1362_v23 = vand.u32 2147483648, %v1347_v25  ;;  %vm1356_vm9 = vweird.f32 %v1347_v25  ;;  %v1360_v29 = vand.u32 2147483647, %v1347_v25 }
 0xfc3   :  { %v1363_v10 = vor.u32 1.1754944e-38, %v1362_v23  ;;  %vm1361_vm11 = vcmp.eq.f32.partialorder %v1360_v29, 8.507059e+37 }
 0xfc7   :  { %v2229_v12 = vpop.eup %2228 }
 0xfc8   :  { %v1350_v14 = vpop.xlane.xlu1 %1349  ;;  %v1352_v37 = vmul.f32 %v2229_v12, %v1347_v25  ;;  %vm1357_vm8 = vweird.f32 %v2229_v12 }
 0xfc9   :  { %2230 = vrcp.f32 %v1350_v14  ;;  %vm1358_vm10 = vmor %vm1356_vm9, %vm1357_vm8  ;;  %v1377_v41 = vand.u32 2147483648, %v1350_v14  ;;  %vm1371_vm13 = vweird.f32 %v1350_v14  ;;  %v1375_v51 = vand.u32 2147483647, %v1350_v14 }
 0xfca   :  { %v1353_v30 = vsub.f32 1.0, %v1352_v37 }
 0xfcb   :  { %v1378_v7 = vor.u32 1.1754944e-38, %v1377_v41  ;;  %vm1376_vm5 = vcmp.eq.f32.partialorder %v1375_v51, 8.507059e+37 }
 0xfcc   :  { %v1354_v21 = vmul.f32 %v2229_v12, %v1353_v30 }
 0xfcd   :  { %v1682_v16 = vpop.xlane.xlu2 %1681 }
 0xfce   :  { %v1686_v18 = vsub.f32 %v1675_v17, %v1682_v16  ;;  %v1355_v15 = vadd.f32 %v2229_v12, %v1354_v21 }
 0xfcf   :  { %v2231_v19 = vpop.eup %2230 }
 0xfd0   :  { %v1688_v20 = vmul.f32 1.442695, %v1686_v18  ;;  %v1367_v22 = vmul.f32 %v2231_v19, %v1350_v14  ;;  %v1359_v3 = vsel %vm1358_vm10, %v2229_v12, %v1355_v15  ;;  %vm1372_vm12 = vweird.f32 %v2231_v19 }
 0xfd1   :  { %v1364_v38 = vsel %vm1361_vm11, %v1363_v10, %v1359_v3  ;;  %vm1373_vm14 = vmor %vm1371_vm13, %vm1372_vm12 }
 0xfd2   :  { %2232 = vpow2.f32 %v1688_v20  ;;  %v1368_v49 = vsub.f32 1.0, %v1367_v22  ;;  %v1365_v48 = vmul.f32 %v2925_v50, %v1364_v38 }
 0xfd3   :  { %v1384_v59 = vpop.permute.xlu0 %1383 }
 0xfd4   :  { %2089 = vmatpush.msk.msra.mxu1 %vm372_vm2, %v1384_v59  ;;  %v1369_v35 = vmul.f32 %v2231_v19, %v1368_v49 }
 0xfd6   :  { %v1370_v40 = vadd.f32 %v2231_v19, %v1369_v35 }
 0xfd7   :  { %v1536_v17 = vpop.xlane.xlu2 %1535 }
 0xfd8   :  { %v2968_v27 = vpop.eup %2232  ;;  %v1374_v53 = vsel %vm1373_vm14, %v2231_v19, %v1370_v40  ;;  %v1551_v24 = vand.u32 2147483648, %v1536_v17  ;;  %vm1545_vm8 = vweird.f32 %v1536_v17  ;;  %v1549_v56 = vand.u32 2147483647, %v1536_v17 }
 0xfd9   :  { %v1692_v32 = vsel %vm311_vm3, %v2968_v27, 0.0  ;;  %v1379_v34 = vsel %vm1376_vm5, %v1378_v7, %v1374_v53 }
 0xfda   :  { %1693 = vadd.xlane.f32.xlu2 %v1692_v32  ;;  %v1380_v57 = vmul.f32 %v2931_v63, %v1379_v34  ;;  %v1552_v11 = vor.u32 1.1754944e-38, %v1551_v24  ;;  %vm1550_vm9 = vcmp.eq.f32.partialorder %v1549_v56, 8.507059e+37 }
 0xfdb   :  { %v2972_v36 = vpop.permute.xlu0 %1570 }
 0xfe0   :  { %v1382_v45 = vpop.permute.xlu1 %1381 }
 0xfe1   :  { %1409 = vmatpush.msra.mxu1 %v1382_v45 }
 0xfe2   :  { %2090 = vmatmul.msk.f32.vlgmr.msra.gmra.mxu1 %vm311_vm3, %v1365_v48 }
 0xfe3   :  { %v1731_v44 = vpop.permute.xlu0 %1730 }
 0xfe4   :  { %2109 = vmatpush.msk.msra.mxu0 %vm372_vm2, %v1731_v44 }
 0xfe8   :  { %v1729_v55 = vpop.permute.xlu1 %1728 }
 0xfe9   :  { %1756 = vmatpush.msra.mxu0 %v1729_v55 }
 0xfea   :  { %2091 = vmatmul.msk.f32.gmra.mxu1 %vm311_vm3, %v1380_v57 }
 0xff2   :  { %1572 = vrot.lane.b32.xlu2 %v2844_v28, %s2300_s20 }
0x100e   :  { %v1527_v58 = vpop.xlane.xlu0 %1526 }
0x100f   :  { %v1529_v61 = vsub.f32 %v2952_v9, %v1527_v58 }
0x1011   :  { %v1532_v0 = vmul.f32 1.442695, %v1529_v61 }
0x1013   :  { %2234 = vpow2.f32 %v1532_v0  ;;  %v1685_v50 = vpop.xlane.xlu1 %1684 }
0x1014   :  { %v1687_v1 = vsub.f32 %v2957_v31, %v1685_v50 }
0x1016   :  { %v1690_v60 = vmul.f32 1.442695, %v1687_v1 }
0x1018   :  { %2236 = vpow2.f32 %v1690_v60 }
0x1019   :  { %v2983_v4 = vpop.eup %2234  ;;  %2238 = vrcp.f32 %v1536_v17 }
0x101a   :  { %v1537_v63 = vsel %vm315_vm4, %v2983_v4, 0.0 }
0x101b   :  { %1538 = vadd.xlane.f32.xlu2 %v1537_v63 }
0x101e   :  { %v2987_v42 = vpop.eup %2236 }
0x101f   :  { %v1695_v28 = vsel %vm315_vm4, %v2987_v42, 0.0  ;;  %v2239_v43 = vpop.eup %2238 }
0x1020   :  { %v1541_v5 = vmul.f32 %v2239_v43, %v1536_v17  ;;  %vm1546_vm6 = vweird.f32 %v2239_v43 }
0x1021   :  { %v1419_v13 = vpop.permute.xlu0 %1418  ;;  %vm1547_vm4 = vmor %vm1545_vm8, %vm1546_vm6 }
0x1022   :  { %1442 = vmatpush.msra.mxu2 %v1419_v13  ;;  %v1542_v6 = vsub.f32 1.0, %v1541_v5 }
0x1023   :  { %1696 = vadd.xlane.f32.xlu2 %v1695_v28 }
0x1024   :  { %v1543_v52 = vmul.f32 %v2239_v43, %v1542_v6 }
0x1026   :  { %v1544_v33 = vadd.f32 %v2239_v43, %v1543_v52 }
0x1028   :  { %v1548_v31 = vsel %vm1547_vm4, %v2239_v43, %v1544_v33 }
0x1029   :  { %v1553_v12 = vsel %vm1550_vm9, %v1552_v11, %v1548_v31 }
0x102a   :  { %v1554_v16 = vmul.f32 %v2939_v26, %v1553_v12 }
0x102b   :  { %v1608_v23 = vpop.permute.xlu1 %1607 }
0x102c   :  { %1631 = vmatpush.msrb.mxu2 %v1608_v23  ;;  %v2115_v23 = vld [vmem:[%s3091_s8 + $0x20] sm:$0xff] }
0x103b   :  { %1765 = vrot.lane.b32.xlu2 %v2801_v62, %s2294_s12  ;;  %s2017_s12 = sshll.u32 %s3094_s11, 4  ;;  %s2018_s12 = int_to_ptr.hbm [resolvable:$true] %s2017_s12 }
0x104d   :  { %v1694_v9 = vpop.xlane.xlu2 %1693 }
0x104e   :  { %2240 = vrcp.f32 %v1694_v9  ;;  %v1709_v30 = vand.u32 2147483648, %v1694_v9  ;;  %v1707_v19 = vand.u32 2147483647, %v1694_v9  ;;  %vm1703_vm11 = vweird.f32 %v1694_v9 }
0x1050   :  { %v1710_v21 = vor.u32 1.1754944e-38, %v1709_v30  ;;  %vm1708_vm13 = vcmp.eq.f32.partialorder %v1707_v19, 8.507059e+37 }
0x1054   :  { %v2241_v25 = vpop.eup %2240 }
0x1055   :  { %v1699_v62 = vmul.f32 %v2241_v25, %v1694_v9  ;;  %v1573_v14 = vpop.permute.xlu2 %1572  ;;  %vm1704_vm10 = vweird.f32 %v2241_v25  ;;  %v1802_v9 = vpop.permute.xlu0 %1801 }
0x1056   :  { %2100 = vmatpush.msk.msrb.mxu1 %vm372_vm2, %v1573_v14  ;;  %vm1705_vm12 = vmor %vm1703_vm11, %vm1704_vm10 }
0x1057   :  { %v1700_v37 = vsub.f32 1.0, %v1699_v62 }
0x1058   :  { %1598 = vmatpush.msrb.mxu1 %v2972_v36 }
0x1059   :  { %v1701_v18 = vmul.f32 %v2241_v25, %v1700_v37  ;;  %2101 = vmatmul.msk.f32.vlgmr.msrb.gmra.mxu1 %vm311_vm3, %v1554_v16 }
0x105b   :  { %v1702_v20 = vadd.f32 %v2241_v25, %v1701_v18 }
0x105d   :  { %v1706_v22 = vsel %vm1705_vm12, %v2241_v25, %v1702_v20 }
0x105e   :  { %v1711_v59 = vsel %vm1708_vm13, %v1710_v21, %v1706_v22 }
0x105f   :  { %v1411_v15 = vpop.f32.mrf.mxu1  ;;  %v1712_v49 = vmul.f32 %v2968_v27, %v1711_v59 }
0x1060   :  { %2092 = vmatmul.msk.f32.vlgmr.msra.gmra.mxu2 %vm279_vm15, %v1411_v15  ;;  %v2118_v15 = vld [vmem:[%s3091_s8 + $0x38] sm:$0xff] }
0x1061   :  { %2110 = vmatmul.msk.f32.vlgmr.msra.gmra.mxu0 %vm311_vm3, %v1712_v49  ;;  %1884 = vmatpush.msra.mxu2 %v2118_v15  ;;  %v2117_v49 = vld [vmem:[%s3091_s8 + $0x30] sm:$0xff] }
0x1063   :  { %1885 = vmatpush.msra.mxu2 %v2117_v49 }
0x1067   :  { %v1414_v26 = vpop.f32.mrf.mxu1 }
0x1068   :  { %2093 = vmatmul.msk.f32.gmra.mxu2 %vm279_vm15, %v1414_v26  ;;  %v2116_v26 = vld [vmem:[%s3091_s8 + $0x28] sm:$0xff] }
0x1069   :  { %1886 = vmatpush.msra.mxu2 %v2116_v26 }
0x106b   :  { %1887 = vmatpush.msra.mxu2 %v2115_v23 }
0x108e   :  { %v1539_v29 = vpop.xlane.xlu2 %1538 }
0x108f   :  { %2242 = vrcp.f32 %v1539_v29  ;;  %v1566_v36 = vand.u32 2147483648, %v1539_v29  ;;  %v1564_v27 = vand.u32 2147483647, %v1539_v29  ;;  %vm1560_vm14 = vweird.f32 %v1539_v29 }
0x1091   :  { %v1567_v45 = vor.u32 1.1754944e-38, %v1566_v36  ;;  %vm1565_vm6 = vcmp.eq.f32.partialorder %v1564_v27, 8.507059e+37 }
0x1095   :  { %v2243_v32 = vpop.eup %2242 }
0x1096   :  { %v1556_v3 = vmul.f32 %v2243_v32, %v1539_v29  ;;  %v1697_v35 = vpop.xlane.xlu2 %1696  ;;  %vm1561_vm2 = vweird.f32 %v2243_v32 }
0x1097   :  { %2244 = vrcp.f32 %v1697_v35  ;;  %vm1562_vm5 = vmor %vm1560_vm14, %vm1561_vm2  ;;  %v1724_v34 = vand.u32 2147483648, %v1697_v35  ;;  %v1722_v57 = vand.u32 2147483647, %v1697_v35  ;;  %vm1718_vm4 = vweird.f32 %v1697_v35 }
0x1098   :  { %v1557_v10 = vsub.f32 1.0, %v1556_v3 }
0x1099   :  { %v1725_v61 = vor.u32 1.1754944e-38, %v1724_v34  ;;  %vm1723_vm10 = vcmp.eq.f32.partialorder %v1722_v57, 8.507059e+37 }
0x109a   :  { %v1558_v38 = vmul.f32 %v2243_v32, %v1557_v10 }
0x109c   :  { %v1559_v40 = vadd.f32 %v2243_v32, %v1558_v38 }
0x109d   :  { %v2245_v41 = vpop.eup %2244 }
0x109e   :  { %v1714_v48 = vmul.f32 %v2245_v41, %v1697_v35  ;;  %v1563_v51 = vsel %vm1562_vm5, %v2243_v32, %v1559_v40  ;;  %vm1719_vm8 = vweird.f32 %v2245_v41  ;;  %v1766_v60 = vpop.permute.xlu2 %1765 }
0x109f   :  { %v1568_v53 = vsel %vm1565_vm6, %v1567_v45, %v1563_v51  ;;  %vm1720_vm9 = vmor %vm1718_vm4, %vm1719_vm8  ;;  %1789 = vmatpush.msra.mxu1 %v1766_v60  ;;  %v1853_v51 = vperm.slane %v2827_v46, 3 }
0x10a0   :  { %v1715_v7 = vsub.f32 1.0, %v1714_v48  ;;  %v1569_v44 = vmul.f32 %v2983_v4, %v1568_v53 }
0x10a2   :  { %v1716_v55 = vmul.f32 %v2245_v41, %v1715_v7  ;;  %2102 = vmatmul.msk.f32.gmra.mxu1 %vm311_vm3, %v1569_v44  ;;  %v2155_v44 = vld [vmem:[%s3093_s10 + $0x1] ss:$0 sm:$0xff] }
0x10a4   :  { %v1717_v58 = vadd.f32 %v2245_v41, %v1716_v55 }
0x10a6   :  { %v1721_v0 = vsel %vm1720_vm9, %v2245_v41, %v1717_v58  ;;  %v1850_v41 = vperm.slane %v2827_v46, 2 }
0x10a7   :  { %v1726_v50 = vsel %vm1723_vm10, %v1725_v61, %v1721_v0 }
0x10a8   :  { %v1727_v1 = vmul.f32 %v2987_v42, %v1726_v50 }
0x10aa   :  { %2111 = vmatmul.msk.f32.gmra.mxu0 %vm311_vm3, %v1727_v1 }
0x10d6   :  { %v1600_v4 = vpop.f32.mrf.mxu1 }
0x10d7   :  { %2103 = vmatmul.msk.f32.vlgmr.msrb.gmra.mxu2 %vm279_vm15, %v1600_v4 }
0x10de   :  { %v1758_v63 = vpop.f32.mrf.mxu0 }
0x10df   :  { %2112 = vmatmul.msk.f32.vlgmr.msra.gmra.mxu1 %vm279_vm15, %v1758_v63 }
0x10e3   :  { %v1444_v43 = vpop.f32.mrf.mxu2 }
0x10e4   :  { %v1478_v42 = vadd.f32 %v2923_v8, %v1444_v43  ;;  %v2129_v43 = vld [vmem:[%s3092_s9 + $0x70] sm:$0xff] }
0x10eb   :  { %v1447_v13 = vpop.f32.mrf.mxu2 }
0x10ec   :  { %v1481_v11 = vadd.f32 %v2929_v2, %v1447_v13  ;;  %v2128_v13 = vld [vmem:[%s3092_s9 + $0x68] sm:$0xff] }
0x111f   :  { %v1603_v28 = vpop.f32.mrf.mxu1 }
0x1120   :  { %2104 = vmatmul.msk.f32.gmra.mxu2 %vm279_vm15, %v1603_v28 }
0x1127   :  { %v1761_v17 = vpop.f32.mrf.mxu0 }
0x1128   :  { %2113 = vmatmul.msk.f32.gmra.mxu1 %vm279_vm15, %v1761_v17  ;;  %v2130_v17 = vld [vmem:[%s3092_s9 + $0x78] sm:$0xff] }
0x1129   :  { %1963 = vmatpush.msra.mxu3 %v2130_v17 }
0x112b   :  { %1964 = vmatpush.msra.mxu3 %v2129_v43  ;;  %v2262_v43 = vld [vmem:[%s3087_s4] sm:$0xf] }
0x112d   :  { %1965 = vmatpush.msra.mxu3 %v2128_v13  ;;  %v2005_v13 = vperm.slane %v2262_v43, 2 }
0x115a   :  { %v1633_v5 = vpop.f32.mrf.mxu2 }
0x115b   :  { %v1639_v6 = vadd.f32 %v1633_v5, %v1478_v42  ;;  %v2127_v42 = vld [vmem:[%s3092_s9 + $0x60] sm:$0xff]  ;;  %v2126_v5 = vld [vmem:[%s3092_s9 + $0x58] sm:$0xff] }
0x115c   :  { %v1791_v52 = vpop.f32.mrf.mxu1  ;;  %1966 = vmatpush.msra.mxu3 %v2127_v42 }
0x115d   :  { %v1797_v33 = vadd.f32 %v1791_v52, %v1639_v6  ;;  %v2125_v6 = vld [vmem:[%s3092_s9 + $0x50] sm:$0xff] }
0x115e   :  { %1967 = vmatpush.msra.mxu3 %v2126_v5 }
0x115f   :  { %v1799_v24 = vadd.f32 %v1797_v33, %v2783_v39  ;;  %v2124_v33 = vld [vmem:[%s3092_s9 + $0x48] sm:$0xff] }
0x1160   :  { %1968 = vmatpush.msra.mxu3 %v2125_v6  ;;  %v2007_v6 = vperm.slane %v2262_v43, 3 }
0x1161   :  { %v3011_v56 = vadd.f32 %v1802_v9, %v1799_v24  ;;  %v2123_v24 = vld [vmem:[%s3092_s9 + $0x40] sm:$0xff] }
0x1162   :  { %1969 = vmatpush.msra.mxu3 %v2124_v33 }
0x1163   :  { %v1806_v31 = vsel %vm124_vm0, %v3011_v56, 0.0 }
0x1164   :  { %1807 = vadd.xlane.f32.xlu1 %v1806_v31  ;;  %1970 = vmatpush.msra.mxu3 %v2123_v24 }
0x11a3   :  { %v1636_v25 = vpop.f32.mrf.mxu2 }
0x11a4   :  { %v1640_v12 = vadd.f32 %v1636_v25, %v1481_v11 }
0x11a5   :  { %v1794_v62 = vpop.f32.mrf.mxu1 }
0x11a6   :  { %v1798_v14 = vadd.f32 %v1794_v62, %v1640_v12 }
0x11a8   :  { %v1800_v8 = vadd.f32 %v1798_v14, %v2788_v47 }
0x11aa   :  { %v1805_v37 = vadd.f32 %v1802_v9, %v1800_v8 }
0x11ac   :  { %v1809_v16 = vsel %vm128_vm1, %v1805_v37, 0.0 }
0x11ad   :  { %1810 = vadd.xlane.f32.xlu2 %v1809_v16 }
0x11d7   :  { %v1808_v30 = vpop.xlane.xlu1 %1807 }
0x11d8   :  { %v1812_v39 = vmul.f32 %v1808_v30, %v2479_v54 }
0x11da   :  { %v1814_v18 = vsub.f32 %v3011_v56, %v1812_v39 }
0x11dc   :  { %v1816_v19 = vmul.f32 %v1814_v18, %v1814_v18 }
0x11de   :  { %v1818_v20 = vsel %vm124_vm0, %v1816_v19, 0.0 }
0x11df   :  { %1819 = vadd.xlane.f32.xlu0 %v1818_v20 }
0x11f3   :  { %1946 = vrot.lane.b32.xlu0 %v2155_v44, %s2291_s29 }
0x1220   :  { %v1811_v2 = vpop.xlane.xlu2 %1810 }
0x1221   :  { %v1813_v21 = vmul.f32 %v1811_v2, %v2479_v54 }
0x1223   :  { %v1815_v22 = vsub.f32 %v1805_v37, %v1813_v21 }
0x1225   :  { %v1817_v59 = vmul.f32 %v1815_v22, %v1815_v22 }
0x1227   :  { %v1821_v47 = vsel %vm128_vm1, %v1817_v59, 0.0 }
0x1228   :  { %1822 = vadd.xlane.f32.xlu1 %v1821_v47 }
0x1252   :  { %v1820_v29 = vpop.xlane.xlu0 %1819 }
0x1253   :  { %v1824_v32 = vmul.f32 %v1820_v29, %v2479_v54 }
0x1255   :  { %v1826_v3 = vadd.f32 1e-05, %v1824_v32 }
0x1257   :  { %2246 = vrsqrt.f32 %v1826_v3  ;;  %vm1834_vm3 = vweird.f32 %v1826_v3 }
0x125d   :  { %v2247_v35 = vpop.eup %2246 }
0x125e   :  { %v1829_v10 = vmul.f32 %v2247_v35, %v1826_v3  ;;  %vm1835_vm15 = vweird.f32 %v2247_v35 }
0x125f   :  { %vm1836_vm11 = vmor %vm1834_vm3, %vm1835_vm15  ;;  %vm1981_vm15 = vcmask 1040384  }
0x1260   :  { %v1830_v36 = vmul.f32 %v2247_v35, %v1829_v10 }
0x1262   :  { %v1831_v38 = vmul.f32 0.5, %v1830_v36 }
0x1264   :  { %v1832_v27 = vsub.f32 1.5, %v1831_v38 }
0x1266   :  { %v1833_v40 = vmul.f32 %v2247_v35, %v1832_v27 }
0x1268   :  { %v1837_v45 = vsel %vm1836_vm11, %v2247_v35, %v1833_v40 }
0x1269   :  { %v1848_v48 = vmul.f32 %v1837_v45, %v1814_v18 }
0x126b   :  { %v1851_v53 = vmul.f32 %v1850_v41, %v1848_v48 }
0x126d   :  { %v1854_v7 = vadd.f32 %v1853_v51, %v1851_v53 }
0x126f   :  { %2119 = vmatmul.msk.f32.vlgmr.msra.gmra.mxu2 %vm124_vm0, %v1854_v7 }
0x129b   :  { %v1823_v34 = vpop.xlane.xlu1 %1822 }
0x129c   :  { %v1825_v55 = vmul.f32 %v1823_v34, %v2479_v54 }
0x129e   :  { %v1827_v57 = vadd.f32 1e-05, %v1825_v55 }
0x12a0   :  { %2248 = vrsqrt.f32 %v1827_v57  ;;  %vm1844_vm13 = vweird.f32 %v1827_v57 }
0x12a6   :  { %v2249_v58 = vpop.eup %2248 }
0x12a7   :  { %v1839_v61 = vmul.f32 %v2249_v58, %v1827_v57  ;;  %vm1845_vm12 = vweird.f32 %v2249_v58 }
0x12a8   :  { %vm1846_vm2 = vmor %vm1844_vm13, %vm1845_vm12 }
0x12a9   :  { %v1840_v0 = vmul.f32 %v2249_v58, %v1839_v61 }
0x12ab   :  { %v1841_v50 = vmul.f32 0.5, %v1840_v0 }
0x12ad   :  { %v1842_v46 = vsub.f32 1.5, %v1841_v50 }
0x12af   :  { %v1843_v1 = vmul.f32 %v2249_v58, %v1842_v46 }
0x12b1   :  { %v1847_v60 = vsel %vm1846_vm2, %v2249_v58, %v1843_v1 }
0x12b2   :  { %v1849_v4 = vmul.f32 %v1847_v60, %v1815_v22 }
0x12b4   :  { %v1852_v63 = vmul.f32 %v1850_v41, %v1849_v4  ;;  %v1947_v41 = vpop.permute.xlu0 %1946 }
0x12b6   :  { %v1855_v28 = vadd.f32 %v1853_v51, %v1852_v63 }
0x12b8   :  { %2120 = vmatmul.msk.f32.gmra.mxu2 %vm124_vm0, %v1855_v28 }
0x12f2   :  { %v1889_v52 = vpop.f32.mrf.mxu2 }
0x12f3   :  { %v1890_v9 = vadd.f32 %v2155_v44, %v1889_v52 }
0x12f5   :  { %v2121_v31 = vmul.f32 -1.702, %v1890_v9 }
0x12f7   :  { %v1899_v11 = vmul.f32 1.442695, %v2121_v31 }
0x12f9   :  { %2250 = vpow2.f32 %v1899_v11 }
0x12ff   :  { %v2251_v25 = vpop.eup %2250 }
0x1300   :  { %v1903_v12 = vadd.f32 1.0, %v2251_v25 }
0x1302   :  { %2252 = vrcp.f32 %v1903_v12  ;;  %v1916_v37 = vand.u32 2147483648, %v1903_v12  ;;  %v1914_v30 = vand.u32 2147483647, %v1903_v12  ;;  %vm1910_vm14 = vweird.f32 %v1903_v12 }
0x1304   :  { %v1917_v18 = vor.u32 1.1754944e-38, %v1916_v37  ;;  %vm1915_vm6 = vcmp.eq.f32.partialorder %v1914_v30, 8.507059e+37 }
0x1308   :  { %v2253_v62 = vpop.eup %2252 }
0x1309   :  { %v1906_v14 = vmul.f32 %v2253_v62, %v1903_v12  ;;  %vm1911_vm0 = vweird.f32 %v2253_v62 }
0x130a   :  { %vm1912_vm5 = vmor %vm1910_vm14, %vm1911_vm0 }
0x130b   :  { %v1907_v8 = vsub.f32 1.0, %v1906_v14 }
0x130d   :  { %v1908_v16 = vmul.f32 %v2253_v62, %v1907_v8 }
0x130f   :  { %v1909_v39 = vadd.f32 %v2253_v62, %v1908_v16 }
0x1311   :  { %v1913_v19 = vsel %vm1912_vm5, %v2253_v62, %v1909_v39 }
0x1312   :  { %v1918_v20 = vsel %vm1915_vm6, %v1917_v18, %v1913_v19 }
0x1313   :  { %v1935_v2 = vmul.f32 %v1918_v20, %v1890_v9 }
0x1315   :  { %2131 = vmatmul.msk.f32.vlgmr.msra.gmra.mxu3 %vm1050_vm7, %v1935_v2 }
0x133b   :  { %v1892_v21 = vpop.f32.mrf.mxu2 }
0x133c   :  { %v1893_v22 = vadd.f32 %v2155_v44, %v1892_v21 }
0x133e   :  { %v2122_v59 = vmul.f32 -1.702, %v1893_v22 }
0x1340   :  { %v1901_v47 = vmul.f32 1.442695, %v2122_v59 }
0x1342   :  { %2254 = vpow2.f32 %v1901_v47 }
0x1348   :  { %v2255_v15 = vpop.eup %2254 }
0x1349   :  { %v1904_v49 = vadd.f32 1.0, %v2255_v15 }
0x134b   :  { %2256 = vrcp.f32 %v1904_v49  ;;  %v1931_v32 = vand.u32 2147483648, %v1904_v49  ;;  %v1929_v35 = vand.u32 2147483647, %v1904_v49  ;;  %vm1925_vm4 = vweird.f32 %v1904_v49 }
0x134d   :  { %v1932_v36 = vor.u32 1.1754944e-38, %v1931_v32  ;;  %vm1930_vm10 = vcmp.eq.f32.partialorder %v1929_v35, 8.507059e+37 }
0x1351   :  { %v2257_v26 = vpop.eup %2256 }
0x1352   :  { %v1921_v23 = vmul.f32 %v2257_v26, %v1904_v49  ;;  %vm1926_vm8 = vweird.f32 %v2257_v26 }
0x1353   :  { %vm1927_vm9 = vmor %vm1925_vm4, %vm1926_vm8 }
0x1354   :  { %v1922_v29 = vsub.f32 1.0, %v1921_v23 }
0x1356   :  { %v1923_v3 = vmul.f32 %v2257_v26, %v1922_v29 }
0x1358   :  { %v1924_v10 = vadd.f32 %v2257_v26, %v1923_v3 }
0x135a   :  { %v1928_v38 = vsel %vm1927_vm9, %v2257_v26, %v1924_v10 }
0x135b   :  { %v1933_v27 = vsel %vm1930_vm10, %v1932_v36, %v1928_v38 }
0x135c   :  { %v1936_v40 = vmul.f32 %v1933_v27, %v1893_v22 }
0x135e   :  { %2132 = vmatmul.msk.f32.gmra.mxu3 %vm1050_vm7, %v1936_v40 }
0x1398   :  { %v1972_v45 = vpop.f32.mrf.mxu3 }
0x1399   :  { %v1973_v48 = vadd.f32 %v1972_v45, %v1947_v41 }
0x139b   :  { %v1977_v51 = vadd.f32 %v1973_v48, %v3011_v56 }
0x139d   :  { %v1979_v53 = vrot.slane %v1977_v51, 4 }
0x139f   :  { %v1982_v7 = vsel %vm1981_vm15, %v1977_v51, %v1979_v53 }
0x13a0   :  { %v1983_v44 = vsel %vm128_vm1, %v1982_v7, 0.0 }
0x13a1   :  { %1984 = vadd.xlane.f32.xlu2 %v1983_v44 }
0x13e1   :  { %v1975_v34 = vpop.f32.mrf.mxu3 }
0x1414   :  { %v1985_v55 = vpop.xlane.xlu2 %1984 }
0x1415   :  { %v1986_v57 = vmul.f32 %v1985_v55, %v2479_v54 }
0x1417   :  { %v1987_v58 = vsub.f32 %v1982_v7, %v1986_v57 }
0x1419   :  { %v1988_v61 = vmul.f32 %v1987_v58, %v1987_v58 }
0x141b   :  { %v1989_v0 = vsel %vm128_vm1, %v1988_v61, 0.0 }
0x141c   :  { %1990 = vadd.xlane.f32.xlu1 %v1989_v0 }
0x148f   :  { %v1991_v50 = vpop.xlane.xlu1 %1990 }
0x1490   :  { %v1992_v46 = vmul.f32 %v1991_v50, %v2479_v54 }
0x1492   :  { %v1993_v1 = vadd.f32 1e-05, %v1992_v46 }
0x1494   :  { %2258 = vrsqrt.f32 %v1993_v1  ;;  %vm2000_vm3 = vweird.f32 %v1993_v1 }
0x149a   :  { %v2259_v56 = vpop.eup %2258 }
0x149b   :  { %v1995_v60 = vmul.f32 %v2259_v56, %v1993_v1  ;;  %vm2001_vm7 = vweird.f32 %v2259_v56 }
0x149c   :  { %vm2002_vm11 = vmor %vm2000_vm3, %vm2001_vm7 }
0x149d   :  { %v1996_v4 = vmul.f32 %v2259_v56, %v1995_v60 }
0x149f   :  { %v1997_v63 = vmul.f32 0.5, %v1996_v4 }
0x14a1   :  { %v1998_v28 = vsub.f32 1.5, %v1997_v63 }
0x14a3   :  { %v1999_v17 = vmul.f32 %v2259_v56, %v1998_v28 }
0x14a5   :  { %v2003_v42 = vsel %vm2002_vm11, %v2259_v56, %v1999_v17 }
0x14a6   :  { %v2004_v5 = vmul.f32 %v2003_v42, %v1987_v58 }
0x14a8   :  { %v2006_v54 = vmul.f32 %v2005_v13, %v2004_v5 }
0x14aa   :  { %v2008_v52 = vadd.f32 %v2007_v6, %v2006_v54 }
0x14ac   :  { %2009 = vst.msk [vmem:[#allocation2] sm:$0x3] %vm128_vm1, %v2008_v52 }
0x14ad   :  { %2020 = dma.vmem_to_hbm [thread:$0]  %s2016_s3, 32, %s2018_s12, [#allocation3]  }
0x14ae   :  { %2287 = dma.done.wait [#allocation3], 32  }
0x14af   :  { %2288 = vsyncadd [#allocation3], 4294967264 }
0x14b0   :  { %2025 = vsyncpa [#allocation3], 1 }

</bundles_post_ra>
